<compile_context>
chip_gen: v7x
topology: tpu7x:2x2x1
jax: 0.10.0
libtpu: 0.0.40
codegen_flags: <defaults>
</compile_context>

<pallas_src>
import jax
import jax.numpy as jnp
from jax.experimental import pallas as pl
from jax.experimental.pallas import tpu as pltpu


LANE = 128                 # lane width: last dim of every block
MAX_ROWS_PER_BLOCK = 256   # 256 x 128 f32 points = 128 KiB per in/out buffer


def _net_kernel(x_ref, w1_ref, b1_ref, w2_ref, b2_ref, o_ref):
    # x_ref : (TR, 128)  lane-dense slab of scalar input points (VMEM)
    # w1_ref: (H,)       hidden-layer weight  (SMEM scalars)
    # b1_ref: (H,)       hidden-layer bias    (SMEM scalars)
    # w2_ref: (H,)       output-layer weight  (SMEM scalars)
    # b2_ref: (1,)       output-layer bias    (SMEM scalar)
    # o_ref : (TR, 128)  lane-dense output
    x = x_ref[...]                              # (TR, 128)
    acc = jnp.zeros_like(x)                     # f32 accumulator vregs

    H = w1_ref.shape[0]
    for h in range(H):                          # unrolled: H = 32 hidden units
        z = x * w1_ref[h] + b1_ref[h]           # scalar-broadcast FMA (VPU)
        s = 0.5 * jnp.tanh(0.5 * z) + 0.5       # sigmoid: single EUP transcendental
        acc = acc + w2_ref[h] * s               # scalar-broadcast FMA (VPU)

    o_ref[...] = (acc + b2_ref[0]).astype(o_ref.dtype)


def prepare_params(w1, b1, w2, b2):
    """One-time layout transform of PyTorch-style Linear parameters.

    w1: (H, 1), b1: (H,), w2: (1, H), b2: (1,). All become flat f32 vectors
    destined for SMEM. Do this ONCE and reuse for every forward.
    """
    H = w1.shape[0]
    return dict(
        w1=w1.reshape(H).astype(jnp.float32),   # (H,)
        b1=b1.reshape(H).astype(jnp.float32),   # (H,)
        w2=w2.reshape(H).astype(jnp.float32),   # (H,)
        b2=b2.reshape(1).astype(jnp.float32),   # (1,)
    )


def net_forward_points(points, params):
    """Evaluate the MLP at a flat vector of scalar points.

    points: (N,) f32. Returns (N,) f32 predictions. Points are packed into a
    lane-dense (rows, 128) slab; a single block is used when it fits, else
    256-row lane-dense tiles are streamed over a parallel grid.
    """
    N = points.shape[0]
    n_rows_raw = pl.cdiv(N, LANE)
    if n_rows_raw <= MAX_ROWS_PER_BLOCK:
        tr = n_rows_raw                 # one full-array block, grid=(1,)
    else:
        tr = MAX_ROWS_PER_BLOCK         # (256, 128) tiles, divisible by (8, 128)
    rows = pl.cdiv(n_rows_raw, tr) * tr
    pad = rows * LANE - N
    xp = jnp.pad(points.astype(jnp.float32), (0, pad)) if pad else points.astype(jnp.float32)
    x2 = xp.reshape(rows, LANE)

    grid = (rows // tr,)
    smem = pl.BlockSpec(memory_space=pltpu.MemorySpace.SMEM)

    out = pl.pallas_call(
        _net_kernel,
        out_shape=jax.ShapeDtypeStruct((rows, LANE), jnp.float32),
        grid_spec=pltpu.PrefetchScalarGridSpec(
            num_scalar_prefetch=0,
            grid=grid,
            in_specs=[
                pl.BlockSpec((tr, LANE), lambda i: (i, 0)),   # x tile (lane-dense)
                smem,                                         # w1 scalars
                smem,                                         # b1 scalars
                smem,                                         # w2 scalars
                smem,                                         # b2 scalar
            ],
            out_specs=pl.BlockSpec((tr, LANE), lambda i: (i, 0)),
        ),
        compiler_params=pltpu.CompilerParams(
            dimension_semantics=("parallel",),   # v7x: shard row tiles across both TCs
        ),
    )(x2, params["w1"], params["b1"], params["w2"], params["b2"])

    return out.reshape(-1)[:N]


def net_forward_batched(x, params):
    """Batched forward. x: (B, P) scalar inputs; returns (B, P) predictions."""
    B, P = x.shape
    return net_forward_points(x.reshape(-1), params).reshape(B, P)


def net_forward(x, params):
    """Module-faithful forward: x (P, n_feature=1) -> (P, n_output=1)."""
    P = x.shape[0]
    return net_forward_points(x.reshape(-1), params).reshape(P, 1)


if __name__ == "__main__":
    N_FEATURE, N_HIDDEN, N_OUTPUT = 1, 32, 1
    STEPS = 16      # points per forward (matches the laplace script's linspace)
    BATCH = 16      # number of forwards amortized into one pallas_call

    key = jax.random.PRNGKey(0)
    k1, k2, k3, k4 = jax.random.split(key, 4)

    # PyTorch-style uniform(-1/sqrt(fan_in), +1/sqrt(fan_in)) init.
    bound1 = 1.0 / (N_FEATURE ** 0.5)
    bound2 = 1.0 / (N_HIDDEN ** 0.5)
    w1 = jax.random.uniform(k1, (N_HIDDEN, N_FEATURE), jnp.float32, -bound1, bound1)
    b1 = jax.random.uniform(k2, (N_HIDDEN,), jnp.float32, -bound1, bound1)
    w2 = jax.random.uniform(k3, (N_OUTPUT, N_HIDDEN), jnp.float32, -bound2, bound2)
    b2 = jax.random.uniform(k4, (N_OUTPUT,), jnp.float32, -bound2, bound2)

    params = prepare_params(w1, b1, w2, b2)   # layout once, reuse everywhere

    # Batched inputs: BATCH rows of linspace(0,1,STEPS) with small deterministic
    # per-row offsets (stand-in for the Laplace plotting / sampling grid).
    base = jnp.linspace(0.0, 1.0, STEPS, dtype=jnp.float32)
    offsets = jnp.linspace(-0.05, 0.05, BATCH, dtype=jnp.float32).reshape(BATCH, 1)
    xb = base.reshape(1, STEPS) + offsets                       # (BATCH, STEPS)

    out_b = jax.block_until_ready(net_forward_batched(xb, params))    # (BATCH, STEPS)

    # Also exercise the module-faithful single-forward path: (STEPS, 1) -> (STEPS, 1).
    x_single = base.reshape(STEPS, N_FEATURE)
    out_s = jax.block_until_ready(net_forward(x_single, params))

    # Reference (plain JAX, PyTorch Net semantics).
    def ref_forward(xp):                      # xp: (P, 1)
        h = 1.0 / (1.0 + jnp.exp(-(xp @ w1.T + b1)))
        return h @ w2.T + b2

    ref_b = ref_forward(xb.reshape(-1, 1)).reshape(BATCH, STEPS)
    ref_s = ref_forward(x_single)

    assert out_b.shape == (BATCH, STEPS)
    assert out_s.shape == (STEPS, N_OUTPUT)
    assert jnp.allclose(out_b, ref_b, atol=1e-5, rtol=1e-5), "batched mismatch vs reference"
    assert jnp.allclose(out_s, ref_s, atol=1e-5, rtol=1e-5), "single-forward mismatch vs reference"

    print("KERNEL_OK")
</pallas_src>

<mosaic_0001>
module attributes {stable_mosaic.version = 11 : i64} {
  func.func @_net_kernel(%arg0: i32, %arg1: memref<2x128xf32, #tpu.memory_space<vmem>>, %arg2: memref<32xf32, #tpu.memory_space<smem>>, %arg3: memref<32xf32, #tpu.memory_space<smem>>, %arg4: memref<32xf32, #tpu.memory_space<smem>>, %arg5: memref<1xf32, #tpu.memory_space<smem>>, %arg6: memref<2x128xf32, #tpu.memory_space<vmem>>) attributes {dimension_semantics = [#tpu.dimension_semantics<parallel>], iteration_bounds = array<i64: 1>, scalar_prefetch = 0 : i64, scratch_operands = 0 : i64, tpu.core_type = #tpu.core_type<tc>, window_params = [{transform_indices = @transform_0, window_bounds = array<i64: 2, 128>}, {transform_indices = @transform_1, window_bounds = array<i64: 32>}, {transform_indices = @transform_2, window_bounds = array<i64: 32>}, {transform_indices = @transform_3, window_bounds = array<i64: 32>}, {transform_indices = @transform_4, window_bounds = array<i64: 1>}, {transform_indices = @transform_5, window_bounds = array<i64: 2, 128>}]} {
    %c0 = arith.constant 0 : index
    %c0_0 = arith.constant 0 : index
    %0 = vector.load %arg1[%c0, %c0_0] : memref<2x128xf32, #tpu.memory_space<vmem>>, vector<2x128xf32>
    %cst = arith.constant 0.000000e+00 : f32
    %1 = vector.broadcast %cst : f32 to vector<2x128xf32>
    %c0_1 = arith.constant 0 : index
    %2 = memref.load %arg2[%c0_1] : memref<32xf32, #tpu.memory_space<smem>>
    %3 = vector.broadcast %2 : f32 to vector<2x128xf32>
    %4 = arith.mulf %0, %3 : vector<2x128xf32>
    %c0_2 = arith.constant 0 : index
    %5 = memref.load %arg3[%c0_2] : memref<32xf32, #tpu.memory_space<smem>>
    %6 = vector.broadcast %5 : f32 to vector<2x128xf32>
    %7 = arith.addf %4, %6 : vector<2x128xf32>
    %cst_3 = arith.constant 5.000000e-01 : f32
    %8 = vector.broadcast %cst_3 : f32 to vector<2x128xf32>
    %9 = arith.mulf %8, %7 : vector<2x128xf32>
    %10 = math.tanh %9 : vector<2x128xf32>
    %cst_4 = arith.constant 5.000000e-01 : f32
    %11 = vector.broadcast %cst_4 : f32 to vector<2x128xf32>
    %12 = arith.mulf %11, %10 : vector<2x128xf32>
    %cst_5 = arith.constant 5.000000e-01 : f32
    %13 = vector.broadcast %cst_5 : f32 to vector<2x128xf32>
    %14 = arith.addf %12, %13 : vector<2x128xf32>
    %c0_6 = arith.constant 0 : index
    %15 = memref.load %arg4[%c0_6] : memref<32xf32, #tpu.memory_space<smem>>
    %16 = vector.broadcast %15 : f32 to vector<2x128xf32>
    %17 = arith.mulf %16, %14 : vector<2x128xf32>
    %18 = arith.addf %1, %17 : vector<2x128xf32>
    %c1 = arith.constant 1 : index
    %19 = memref.load %arg2[%c1] : memref<32xf32, #tpu.memory_space<smem>>
    %20 = vector.broadcast %19 : f32 to vector<2x128xf32>
    %21 = arith.mulf %0, %20 : vector<2x128xf32>
    %c1_7 = arith.constant 1 : index
    %22 = memref.load %arg3[%c1_7] : memref<32xf32, #tpu.memory_space<smem>>
    %23 = vector.broadcast %22 : f32 to vector<2x128xf32>
    %24 = arith.addf %21, %23 : vector<2x128xf32>
    %cst_8 = arith.constant 5.000000e-01 : f32
    %25 = vector.broadcast %cst_8 : f32 to vector<2x128xf32>
    %26 = arith.mulf %25, %24 : vector<2x128xf32>
    %27 = math.tanh %26 : vector<2x128xf32>
    %cst_9 = arith.constant 5.000000e-01 : f32
    %28 = vector.broadcast %cst_9 : f32 to vector<2x128xf32>
    %29 = arith.mulf %28, %27 : vector<2x128xf32>
    %cst_10 = arith.constant 5.000000e-01 : f32
    %30 = vector.broadcast %cst_10 : f32 to vector<2x128xf32>
    %31 = arith.addf %29, %30 : vector<2x128xf32>
    %c1_11 = arith.constant 1 : index
    %32 = memref.load %arg4[%c1_11] : memref<32xf32, #tpu.memory_space<smem>>
    %33 = vector.broadcast %32 : f32 to vector<2x128xf32>
    %34 = arith.mulf %33, %31 : vector<2x128xf32>
    %35 = arith.addf %18, %34 : vector<2x128xf32>
    %c2 = arith.constant 2 : index
    %36 = memref.load %arg2[%c2] : memref<32xf32, #tpu.memory_space<smem>>
    %37 = vector.broadcast %36 : f32 to vector<2x128xf32>
    %38 = arith.mulf %0, %37 : vector<2x128xf32>
    %c2_12 = arith.constant 2 : index
    %39 = memref.load %arg3[%c2_12] : memref<32xf32, #tpu.memory_space<smem>>
    %40 = vector.broadcast %39 : f32 to vector<2x128xf32>
    %41 = arith.addf %38, %40 : vector<2x128xf32>
    %cst_13 = arith.constant 5.000000e-01 : f32
    %42 = vector.broadcast %cst_13 : f32 to vector<2x128xf32>
    %43 = arith.mulf %42, %41 : vector<2x128xf32>
    %44 = math.tanh %43 : vector<2x128xf32>
    %cst_14 = arith.constant 5.000000e-01 : f32
    %45 = vector.broadcast %cst_14 : f32 to vector<2x128xf32>
    %46 = arith.mulf %45, %44 : vector<2x128xf32>
    %cst_15 = arith.constant 5.000000e-01 : f32
    %47 = vector.broadcast %cst_15 : f32 to vector<2x128xf32>
    %48 = arith.addf %46, %47 : vector<2x128xf32>
    %c2_16 = arith.constant 2 : index
    %49 = memref.load %arg4[%c2_16] : memref<32xf32, #tpu.memory_space<smem>>
    %50 = vector.broadcast %49 : f32 to vector<2x128xf32>
    %51 = arith.mulf %50, %48 : vector<2x128xf32>
    %52 = arith.addf %35, %51 : vector<2x128xf32>
    %c3 = arith.constant 3 : index
    %53 = memref.load %arg2[%c3] : memref<32xf32, #tpu.memory_space<smem>>
    %54 = vector.broadcast %53 : f32 to vector<2x128xf32>
    %55 = arith.mulf %0, %54 : vector<2x128xf32>
    %c3_17 = arith.constant 3 : index
    %56 = memref.load %arg3[%c3_17] : memref<32xf32, #tpu.memory_space<smem>>
    %57 = vector.broadcast %56 : f32 to vector<2x128xf32>
    %58 = arith.addf %55, %57 : vector<2x128xf32>
    %cst_18 = arith.constant 5.000000e-01 : f32
    %59 = vector.broadcast %cst_18 : f32 to vector<2x128xf32>
    %60 = arith.mulf %59, %58 : vector<2x128xf32>
    %61 = math.tanh %60 : vector<2x128xf32>
    %cst_19 = arith.constant 5.000000e-01 : f32
    %62 = vector.broadcast %cst_19 : f32 to vector<2x128xf32>
    %63 = arith.mulf %62, %61 : vector<2x128xf32>
    %cst_20 = arith.constant 5.000000e-01 : f32
    %64 = vector.broadcast %cst_20 : f32 to vector<2x128xf32>
    %65 = arith.addf %63, %64 : vector<2x128xf32>
    %c3_21 = arith.constant 3 : index
    %66 = memref.load %arg4[%c3_21] : memref<32xf32, #tpu.memory_space<smem>>
    %67 = vector.broadcast %66 : f32 to vector<2x128xf32>
    %68 = arith.mulf %67, %65 : vector<2x128xf32>
    %69 = arith.addf %52, %68 : vector<2x128xf32>
    %c4 = arith.constant 4 : index
    %70 = memref.load %arg2[%c4] : memref<32xf32, #tpu.memory_space<smem>>
    %71 = vector.broadcast %70 : f32 to vector<2x128xf32>
    %72 = arith.mulf %0, %71 : vector<2x128xf32>
    %c4_22 = arith.constant 4 : index
    %73 = memref.load %arg3[%c4_22] : memref<32xf32, #tpu.memory_space<smem>>
    %74 = vector.broadcast %73 : f32 to vector<2x128xf32>
    %75 = arith.addf %72, %74 : vector<2x128xf32>
    %cst_23 = arith.constant 5.000000e-01 : f32
    %76 = vector.broadcast %cst_23 : f32 to vector<2x128xf32>
    %77 = arith.mulf %76, %75 : vector<2x128xf32>
    %78 = math.tanh %77 : vector<2x128xf32>
    %cst_24 = arith.constant 5.000000e-01 : f32
    %79 = vector.broadcast %cst_24 : f32 to vector<2x128xf32>
    %80 = arith.mulf %79, %78 : vector<2x128xf32>
    %cst_25 = arith.constant 5.000000e-01 : f32
    %81 = vector.broadcast %cst_25 : f32 to vector<2x128xf32>
    %82 = arith.addf %80, %81 : vector<2x128xf32>
    %c4_26 = arith.constant 4 : index
    %83 = memref.load %arg4[%c4_26] : memref<32xf32, #tpu.memory_space<smem>>
    %84 = vector.broadcast %83 : f32 to vector<2x128xf32>
    %85 = arith.mulf %84, %82 : vector<2x128xf32>
    %86 = arith.addf %69, %85 : vector<2x128xf32>
    %c5 = arith.constant 5 : index
    %87 = memref.load %arg2[%c5] : memref<32xf32, #tpu.memory_space<smem>>
    %88 = vector.broadcast %87 : f32 to vector<2x128xf32>
    %89 = arith.mulf %0, %88 : vector<2x128xf32>
    %c5_27 = arith.constant 5 : index
    %90 = memref.load %arg3[%c5_27] : memref<32xf32, #tpu.memory_space<smem>>
    %91 = vector.broadcast %90 : f32 to vector<2x128xf32>
    %92 = arith.addf %89, %91 : vector<2x128xf32>
    %cst_28 = arith.constant 5.000000e-01 : f32
    %93 = vector.broadcast %cst_28 : f32 to vector<2x128xf32>
    %94 = arith.mulf %93, %92 : vector<2x128xf32>
    %95 = math.tanh %94 : vector<2x128xf32>
    %cst_29 = arith.constant 5.000000e-01 : f32
    %96 = vector.broadcast %cst_29 : f32 to vector<2x128xf32>
    %97 = arith.mulf %96, %95 : vector<2x128xf32>
    %cst_30 = arith.constant 5.000000e-01 : f32
    %98 = vector.broadcast %cst_30 : f32 to vector<2x128xf32>
    %99 = arith.addf %97, %98 : vector<2x128xf32>
    %c5_31 = arith.constant 5 : index
    %100 = memref.load %arg4[%c5_31] : memref<32xf32, #tpu.memory_space<smem>>
    %101 = vector.broadcast %100 : f32 to vector<2x128xf32>
    %102 = arith.mulf %101, %99 : vector<2x128xf32>
    %103 = arith.addf %86, %102 : vector<2x128xf32>
    %c6 = arith.constant 6 : index
    %104 = memref.load %arg2[%c6] : memref<32xf32, #tpu.memory_space<smem>>
    %105 = vector.broadcast %104 : f32 to vector<2x128xf32>
    %106 = arith.mulf %0, %105 : vector<2x128xf32>
    %c6_32 = arith.constant 6 : index
    %107 = memref.load %arg3[%c6_32] : memref<32xf32, #tpu.memory_space<smem>>
    %108 = vector.broadcast %107 : f32 to vector<2x128xf32>
    %109 = arith.addf %106, %108 : vector<2x128xf32>
    %cst_33 = arith.constant 5.000000e-01 : f32
    %110 = vector.broadcast %cst_33 : f32 to vector<2x128xf32>
    %111 = arith.mulf %110, %109 : vector<2x128xf32>
    %112 = math.tanh %111 : vector<2x128xf32>
    %cst_34 = arith.constant 5.000000e-01 : f32
    %113 = vector.broadcast %cst_34 : f32 to vector<2x128xf32>
    %114 = arith.mulf %113, %112 : vector<2x128xf32>
    %cst_35 = arith.constant 5.000000e-01 : f32
    %115 = vector.broadcast %cst_35 : f32 to vector<2x128xf32>
    %116 = arith.addf %114, %115 : vector<2x128xf32>
    %c6_36 = arith.constant 6 : index
    %117 = memref.load %arg4[%c6_36] : memref<32xf32, #tpu.memory_space<smem>>
    %118 = vector.broadcast %117 : f32 to vector<2x128xf32>
    %119 = arith.mulf %118, %116 : vector<2x128xf32>
    %120 = arith.addf %103, %119 : vector<2x128xf32>
    %c7 = arith.constant 7 : index
    %121 = memref.load %arg2[%c7] : memref<32xf32, #tpu.memory_space<smem>>
    %122 = vector.broadcast %121 : f32 to vector<2x128xf32>
    %123 = arith.mulf %0, %122 : vector<2x128xf32>
    %c7_37 = arith.constant 7 : index
    %124 = memref.load %arg3[%c7_37] : memref<32xf32, #tpu.memory_space<smem>>
    %125 = vector.broadcast %124 : f32 to vector<2x128xf32>
    %126 = arith.addf %123, %125 : vector<2x128xf32>
    %cst_38 = arith.constant 5.000000e-01 : f32
    %127 = vector.broadcast %cst_38 : f32 to vector<2x128xf32>
    %128 = arith.mulf %127, %126 : vector<2x128xf32>
    %129 = math.tanh %128 : vector<2x128xf32>
    %cst_39 = arith.constant 5.000000e-01 : f32
    %130 = vector.broadcast %cst_39 : f32 to vector<2x128xf32>
    %131 = arith.mulf %130, %129 : vector<2x128xf32>
    %cst_40 = arith.constant 5.000000e-01 : f32
    %132 = vector.broadcast %cst_40 : f32 to vector<2x128xf32>
    %133 = arith.addf %131, %132 : vector<2x128xf32>
    %c7_41 = arith.constant 7 : index
    %134 = memref.load %arg4[%c7_41] : memref<32xf32, #tpu.memory_space<smem>>
    %135 = vector.broadcast %134 : f32 to vector<2x128xf32>
    %136 = arith.mulf %135, %133 : vector<2x128xf32>
    %137 = arith.addf %120, %136 : vector<2x128xf32>
    %c8 = arith.constant 8 : index
    %138 = memref.load %arg2[%c8] : memref<32xf32, #tpu.memory_space<smem>>
    %139 = vector.broadcast %138 : f32 to vector<2x128xf32>
    %140 = arith.mulf %0, %139 : vector<2x128xf32>
    %c8_42 = arith.constant 8 : index
    %141 = memref.load %arg3[%c8_42] : memref<32xf32, #tpu.memory_space<smem>>
    %142 = vector.broadcast %141 : f32 to vector<2x128xf32>
    %143 = arith.addf %140, %142 : vector<2x128xf32>
    %cst_43 = arith.constant 5.000000e-01 : f32
    %144 = vector.broadcast %cst_43 : f32 to vector<2x128xf32>
    %145 = arith.mulf %144, %143 : vector<2x128xf32>
    %146 = math.tanh %145 : vector<2x128xf32>
    %cst_44 = arith.constant 5.000000e-01 : f32
    %147 = vector.broadcast %cst_44 : f32 to vector<2x128xf32>
    %148 = arith.mulf %147, %146 : vector<2x128xf32>
    %cst_45 = arith.constant 5.000000e-01 : f32
    %149 = vector.broadcast %cst_45 : f32 to vector<2x128xf32>
    %150 = arith.addf %148, %149 : vector<2x128xf32>
    %c8_46 = arith.constant 8 : index
    %151 = memref.load %arg4[%c8_46] : memref<32xf32, #tpu.memory_space<smem>>
    %152 = vector.broadcast %151 : f32 to vector<2x128xf32>
    %153 = arith.mulf %152, %150 : vector<2x128xf32>
    %154 = arith.addf %137, %153 : vector<2x128xf32>
    %c9 = arith.constant 9 : index
    %155 = memref.load %arg2[%c9] : memref<32xf32, #tpu.memory_space<smem>>
    %156 = vector.broadcast %155 : f32 to vector<2x128xf32>
    %157 = arith.mulf %0, %156 : vector<2x128xf32>
    %c9_47 = arith.constant 9 : index
    %158 = memref.load %arg3[%c9_47] : memref<32xf32, #tpu.memory_space<smem>>
    %159 = vector.broadcast %158 : f32 to vector<2x128xf32>
    %160 = arith.addf %157, %159 : vector<2x128xf32>
    %cst_48 = arith.constant 5.000000e-01 : f32
    %161 = vector.broadcast %cst_48 : f32 to vector<2x128xf32>
    %162 = arith.mulf %161, %160 : vector<2x128xf32>
    %163 = math.tanh %162 : vector<2x128xf32>
    %cst_49 = arith.constant 5.000000e-01 : f32
    %164 = vector.broadcast %cst_49 : f32 to vector<2x128xf32>
    %165 = arith.mulf %164, %163 : vector<2x128xf32>
    %cst_50 = arith.constant 5.000000e-01 : f32
    %166 = vector.broadcast %cst_50 : f32 to vector<2x128xf32>
    %167 = arith.addf %165, %166 : vector<2x128xf32>
    %c9_51 = arith.constant 9 : index
    %168 = memref.load %arg4[%c9_51] : memref<32xf32, #tpu.memory_space<smem>>
    %169 = vector.broadcast %168 : f32 to vector<2x128xf32>
    %170 = arith.mulf %169, %167 : vector<2x128xf32>
    %171 = arith.addf %154, %170 : vector<2x128xf32>
    %c10 = arith.constant 10 : index
    %172 = memref.load %arg2[%c10] : memref<32xf32, #tpu.memory_space<smem>>
    %173 = vector.broadcast %172 : f32 to vector<2x128xf32>
    %174 = arith.mulf %0, %173 : vector<2x128xf32>
    %c10_52 = arith.constant 10 : index
    %175 = memref.load %arg3[%c10_52] : memref<32xf32, #tpu.memory_space<smem>>
    %176 = vector.broadcast %175 : f32 to vector<2x128xf32>
    %177 = arith.addf %174, %176 : vector<2x128xf32>
    %cst_53 = arith.constant 5.000000e-01 : f32
    %178 = vector.broadcast %cst_53 : f32 to vector<2x128xf32>
    %179 = arith.mulf %178, %177 : vector<2x128xf32>
    %180 = math.tanh %179 : vector<2x128xf32>
    %cst_54 = arith.constant 5.000000e-01 : f32
    %181 = vector.broadcast %cst_54 : f32 to vector<2x128xf32>
    %182 = arith.mulf %181, %180 : vector<2x128xf32>
    %cst_55 = arith.constant 5.000000e-01 : f32
    %183 = vector.broadcast %cst_55 : f32 to vector<2x128xf32>
    %184 = arith.addf %182, %183 : vector<2x128xf32>
    %c10_56 = arith.constant 10 : index
    %185 = memref.load %arg4[%c10_56] : memref<32xf32, #tpu.memory_space<smem>>
    %186 = vector.broadcast %185 : f32 to vector<2x128xf32>
    %187 = arith.mulf %186, %184 : vector<2x128xf32>
    %188 = arith.addf %171, %187 : vector<2x128xf32>
    %c11 = arith.constant 11 : index
    %189 = memref.load %arg2[%c11] : memref<32xf32, #tpu.memory_space<smem>>
    %190 = vector.broadcast %189 : f32 to vector<2x128xf32>
    %191 = arith.mulf %0, %190 : vector<2x128xf32>
    %c11_57 = arith.constant 11 : index
    %192 = memref.load %arg3[%c11_57] : memref<32xf32, #tpu.memory_space<smem>>
    %193 = vector.broadcast %192 : f32 to vector<2x128xf32>
    %194 = arith.addf %191, %193 : vector<2x128xf32>
    %cst_58 = arith.constant 5.000000e-01 : f32
    %195 = vector.broadcast %cst_58 : f32 to vector<2x128xf32>
    %196 = arith.mulf %195, %194 : vector<2x128xf32>
    %197 = math.tanh %196 : vector<2x128xf32>
    %cst_59 = arith.constant 5.000000e-01 : f32
    %198 = vector.broadcast %cst_59 : f32 to vector<2x128xf32>
    %199 = arith.mulf %198, %197 : vector<2x128xf32>
    %cst_60 = arith.constant 5.000000e-01 : f32
    %200 = vector.broadcast %cst_60 : f32 to vector<2x128xf32>
    %201 = arith.addf %199, %200 : vector<2x128xf32>
    %c11_61 = arith.constant 11 : index
    %202 = memref.load %arg4[%c11_61] : memref<32xf32, #tpu.memory_space<smem>>
    %203 = vector.broadcast %202 : f32 to vector<2x128xf32>
    %204 = arith.mulf %203, %201 : vector<2x128xf32>
    %205 = arith.addf %188, %204 : vector<2x128xf32>
    %c12 = arith.constant 12 : index
    %206 = memref.load %arg2[%c12] : memref<32xf32, #tpu.memory_space<smem>>
    %207 = vector.broadcast %206 : f32 to vector<2x128xf32>
    %208 = arith.mulf %0, %207 : vector<2x128xf32>
    %c12_62 = arith.constant 12 : index
    %209 = memref.load %arg3[%c12_62] : memref<32xf32, #tpu.memory_space<smem>>
    %210 = vector.broadcast %209 : f32 to vector<2x128xf32>
    %211 = arith.addf %208, %210 : vector<2x128xf32>
    %cst_63 = arith.constant 5.000000e-01 : f32
    %212 = vector.broadcast %cst_63 : f32 to vector<2x128xf32>
    %213 = arith.mulf %212, %211 : vector<2x128xf32>
    %214 = math.tanh %213 : vector<2x128xf32>
    %cst_64 = arith.constant 5.000000e-01 : f32
    %215 = vector.broadcast %cst_64 : f32 to vector<2x128xf32>
    %216 = arith.mulf %215, %214 : vector<2x128xf32>
    %cst_65 = arith.constant 5.000000e-01 : f32
    %217 = vector.broadcast %cst_65 : f32 to vector<2x128xf32>
    %218 = arith.addf %216, %217 : vector<2x128xf32>
    %c12_66 = arith.constant 12 : index
    %219 = memref.load %arg4[%c12_66] : memref<32xf32, #tpu.memory_space<smem>>
    %220 = vector.broadcast %219 : f32 to vector<2x128xf32>
    %221 = arith.mulf %220, %218 : vector<2x128xf32>
    %222 = arith.addf %205, %221 : vector<2x128xf32>
    %c13 = arith.constant 13 : index
    %223 = memref.load %arg2[%c13] : memref<32xf32, #tpu.memory_space<smem>>
    %224 = vector.broadcast %223 : f32 to vector<2x128xf32>
    %225 = arith.mulf %0, %224 : vector<2x128xf32>
    %c13_67 = arith.constant 13 : index
    %226 = memref.load %arg3[%c13_67] : memref<32xf32, #tpu.memory_space<smem>>
    %227 = vector.broadcast %226 : f32 to vector<2x128xf32>
    %228 = arith.addf %225, %227 : vector<2x128xf32>
    %cst_68 = arith.constant 5.000000e-01 : f32
    %229 = vector.broadcast %cst_68 : f32 to vector<2x128xf32>
    %230 = arith.mulf %229, %228 : vector<2x128xf32>
    %231 = math.tanh %230 : vector<2x128xf32>
    %cst_69 = arith.constant 5.000000e-01 : f32
    %232 = vector.broadcast %cst_69 : f32 to vector<2x128xf32>
    %233 = arith.mulf %232, %231 : vector<2x128xf32>
    %cst_70 = arith.constant 5.000000e-01 : f32
    %234 = vector.broadcast %cst_70 : f32 to vector<2x128xf32>
    %235 = arith.addf %233, %234 : vector<2x128xf32>
    %c13_71 = arith.constant 13 : index
    %236 = memref.load %arg4[%c13_71] : memref<32xf32, #tpu.memory_space<smem>>
    %237 = vector.broadcast %236 : f32 to vector<2x128xf32>
    %238 = arith.mulf %237, %235 : vector<2x128xf32>
    %239 = arith.addf %222, %238 : vector<2x128xf32>
    %c14 = arith.constant 14 : index
    %240 = memref.load %arg2[%c14] : memref<32xf32, #tpu.memory_space<smem>>
    %241 = vector.broadcast %240 : f32 to vector<2x128xf32>
    %242 = arith.mulf %0, %241 : vector<2x128xf32>
    %c14_72 = arith.constant 14 : index
    %243 = memref.load %arg3[%c14_72] : memref<32xf32, #tpu.memory_space<smem>>
    %244 = vector.broadcast %243 : f32 to vector<2x128xf32>
    %245 = arith.addf %242, %244 : vector<2x128xf32>
    %cst_73 = arith.constant 5.000000e-01 : f32
    %246 = vector.broadcast %cst_73 : f32 to vector<2x128xf32>
    %247 = arith.mulf %246, %245 : vector<2x128xf32>
    %248 = math.tanh %247 : vector<2x128xf32>
    %cst_74 = arith.constant 5.000000e-01 : f32
    %249 = vector.broadcast %cst_74 : f32 to vector<2x128xf32>
    %250 = arith.mulf %249, %248 : vector<2x128xf32>
    %cst_75 = arith.constant 5.000000e-01 : f32
    %251 = vector.broadcast %cst_75 : f32 to vector<2x128xf32>
    %252 = arith.addf %250, %251 : vector<2x128xf32>
    %c14_76 = arith.constant 14 : index
    %253 = memref.load %arg4[%c14_76] : memref<32xf32, #tpu.memory_space<smem>>
    %254 = vector.broadcast %253 : f32 to vector<2x128xf32>
    %255 = arith.mulf %254, %252 : vector<2x128xf32>
    %256 = arith.addf %239, %255 : vector<2x128xf32>
    %c15 = arith.constant 15 : index
    %257 = memref.load %arg2[%c15] : memref<32xf32, #tpu.memory_space<smem>>
    %258 = vector.broadcast %257 : f32 to vector<2x128xf32>
    %259 = arith.mulf %0, %258 : vector<2x128xf32>
    %c15_77 = arith.constant 15 : index
    %260 = memref.load %arg3[%c15_77] : memref<32xf32, #tpu.memory_space<smem>>
    %261 = vector.broadcast %260 : f32 to vector<2x128xf32>
    %262 = arith.addf %259, %261 : vector<2x128xf32>
    %cst_78 = arith.constant 5.000000e-01 : f32
    %263 = vector.broadcast %cst_78 : f32 to vector<2x128xf32>
    %264 = arith.mulf %263, %262 : vector<2x128xf32>
    %265 = math.tanh %264 : vector<2x128xf32>
    %cst_79 = arith.constant 5.000000e-01 : f32
    %266 = vector.broadcast %cst_79 : f32 to vector<2x128xf32>
    %267 = arith.mulf %266, %265 : vector<2x128xf32>
    %cst_80 = arith.constant 5.000000e-01 : f32
    %268 = vector.broadcast %cst_80 : f32 to vector<2x128xf32>
    %269 = arith.addf %267, %268 : vector<2x128xf32>
    %c15_81 = arith.constant 15 : index
    %270 = memref.load %arg4[%c15_81] : memref<32xf32, #tpu.memory_space<smem>>
    %271 = vector.broadcast %270 : f32 to vector<2x128xf32>
    %272 = arith.mulf %271, %269 : vector<2x128xf32>
    %273 = arith.addf %256, %272 : vector<2x128xf32>
    %c16 = arith.constant 16 : index
    %274 = memref.load %arg2[%c16] : memref<32xf32, #tpu.memory_space<smem>>
    %275 = vector.broadcast %274 : f32 to vector<2x128xf32>
    %276 = arith.mulf %0, %275 : vector<2x128xf32>
    %c16_82 = arith.constant 16 : index
    %277 = memref.load %arg3[%c16_82] : memref<32xf32, #tpu.memory_space<smem>>
    %278 = vector.broadcast %277 : f32 to vector<2x128xf32>
    %279 = arith.addf %276, %278 : vector<2x128xf32>
    %cst_83 = arith.constant 5.000000e-01 : f32
    %280 = vector.broadcast %cst_83 : f32 to vector<2x128xf32>
    %281 = arith.mulf %280, %279 : vector<2x128xf32>
    %282 = math.tanh %281 : vector<2x128xf32>
    %cst_84 = arith.constant 5.000000e-01 : f32
    %283 = vector.broadcast %cst_84 : f32 to vector<2x128xf32>
    %284 = arith.mulf %283, %282 : vector<2x128xf32>
    %cst_85 = arith.constant 5.000000e-01 : f32
    %285 = vector.broadcast %cst_85 : f32 to vector<2x128xf32>
    %286 = arith.addf %284, %285 : vector<2x128xf32>
    %c16_86 = arith.constant 16 : index
    %287 = memref.load %arg4[%c16_86] : memref<32xf32, #tpu.memory_space<smem>>
    %288 = vector.broadcast %287 : f32 to vector<2x128xf32>
    %289 = arith.mulf %288, %286 : vector<2x128xf32>
    %290 = arith.addf %273, %289 : vector<2x128xf32>
    %c17 = arith.constant 17 : index
    %291 = memref.load %arg2[%c17] : memref<32xf32, #tpu.memory_space<smem>>
    %292 = vector.broadcast %291 : f32 to vector<2x128xf32>
    %293 = arith.mulf %0, %292 : vector<2x128xf32>
    %c17_87 = arith.constant 17 : index
    %294 = memref.load %arg3[%c17_87] : memref<32xf32, #tpu.memory_space<smem>>
    %295 = vector.broadcast %294 : f32 to vector<2x128xf32>
    %296 = arith.addf %293, %295 : vector<2x128xf32>
    %cst_88 = arith.constant 5.000000e-01 : f32
    %297 = vector.broadcast %cst_88 : f32 to vector<2x128xf32>
    %298 = arith.mulf %297, %296 : vector<2x128xf32>
    %299 = math.tanh %298 : vector<2x128xf32>
    %cst_89 = arith.constant 5.000000e-01 : f32
    %300 = vector.broadcast %cst_89 : f32 to vector<2x128xf32>
    %301 = arith.mulf %300, %299 : vector<2x128xf32>
    %cst_90 = arith.constant 5.000000e-01 : f32
    %302 = vector.broadcast %cst_90 : f32 to vector<2x128xf32>
    %303 = arith.addf %301, %302 : vector<2x128xf32>
    %c17_91 = arith.constant 17 : index
    %304 = memref.load %arg4[%c17_91] : memref<32xf32, #tpu.memory_space<smem>>
    %305 = vector.broadcast %304 : f32 to vector<2x128xf32>
    %306 = arith.mulf %305, %303 : vector<2x128xf32>
    %307 = arith.addf %290, %306 : vector<2x128xf32>
    %c18 = arith.constant 18 : index
    %308 = memref.load %arg2[%c18] : memref<32xf32, #tpu.memory_space<smem>>
    %309 = vector.broadcast %308 : f32 to vector<2x128xf32>
    %310 = arith.mulf %0, %309 : vector<2x128xf32>
    %c18_92 = arith.constant 18 : index
    %311 = memref.load %arg3[%c18_92] : memref<32xf32, #tpu.memory_space<smem>>
    %312 = vector.broadcast %311 : f32 to vector<2x128xf32>
    %313 = arith.addf %310, %312 : vector<2x128xf32>
    %cst_93 = arith.constant 5.000000e-01 : f32
    %314 = vector.broadcast %cst_93 : f32 to vector<2x128xf32>
    %315 = arith.mulf %314, %313 : vector<2x128xf32>
    %316 = math.tanh %315 : vector<2x128xf32>
    %cst_94 = arith.constant 5.000000e-01 : f32
    %317 = vector.broadcast %cst_94 : f32 to vector<2x128xf32>
    %318 = arith.mulf %317, %316 : vector<2x128xf32>
    %cst_95 = arith.constant 5.000000e-01 : f32
    %319 = vector.broadcast %cst_95 : f32 to vector<2x128xf32>
    %320 = arith.addf %318, %319 : vector<2x128xf32>
    %c18_96 = arith.constant 18 : index
    %321 = memref.load %arg4[%c18_96] : memref<32xf32, #tpu.memory_space<smem>>
    %322 = vector.broadcast %321 : f32 to vector<2x128xf32>
    %323 = arith.mulf %322, %320 : vector<2x128xf32>
    %324 = arith.addf %307, %323 : vector<2x128xf32>
    %c19 = arith.constant 19 : index
    %325 = memref.load %arg2[%c19] : memref<32xf32, #tpu.memory_space<smem>>
    %326 = vector.broadcast %325 : f32 to vector<2x128xf32>
    %327 = arith.mulf %0, %326 : vector<2x128xf32>
    %c19_97 = arith.constant 19 : index
    %328 = memref.load %arg3[%c19_97] : memref<32xf32, #tpu.memory_space<smem>>
    %329 = vector.broadcast %328 : f32 to vector<2x128xf32>
    %330 = arith.addf %327, %329 : vector<2x128xf32>
    %cst_98 = arith.constant 5.000000e-01 : f32
    %331 = vector.broadcast %cst_98 : f32 to vector<2x128xf32>
    %332 = arith.mulf %331, %330 : vector<2x128xf32>
    %333 = math.tanh %332 : vector<2x128xf32>
    %cst_99 = arith.constant 5.000000e-01 : f32
    %334 = vector.broadcast %cst_99 : f32 to vector<2x128xf32>
    %335 = arith.mulf %334, %333 : vector<2x128xf32>
    %cst_100 = arith.constant 5.000000e-01 : f32
    %336 = vector.broadcast %cst_100 : f32 to vector<2x128xf32>
    %337 = arith.addf %335, %336 : vector<2x128xf32>
    %c19_101 = arith.constant 19 : index
    %338 = memref.load %arg4[%c19_101] : memref<32xf32, #tpu.memory_space<smem>>
    %339 = vector.broadcast %338 : f32 to vector<2x128xf32>
    %340 = arith.mulf %339, %337 : vector<2x128xf32>
    %341 = arith.addf %324, %340 : vector<2x128xf32>
    %c20 = arith.constant 20 : index
    %342 = memref.load %arg2[%c20] : memref<32xf32, #tpu.memory_space<smem>>
    %343 = vector.broadcast %342 : f32 to vector<2x128xf32>
    %344 = arith.mulf %0, %343 : vector<2x128xf32>
    %c20_102 = arith.constant 20 : index
    %345 = memref.load %arg3[%c20_102] : memref<32xf32, #tpu.memory_space<smem>>
    %346 = vector.broadcast %345 : f32 to vector<2x128xf32>
    %347 = arith.addf %344, %346 : vector<2x128xf32>
    %cst_103 = arith.constant 5.000000e-01 : f32
    %348 = vector.broadcast %cst_103 : f32 to vector<2x128xf32>
    %349 = arith.mulf %348, %347 : vector<2x128xf32>
    %350 = math.tanh %349 : vector<2x128xf32>
    %cst_104 = arith.constant 5.000000e-01 : f32
    %351 = vector.broadcast %cst_104 : f32 to vector<2x128xf32>
    %352 = arith.mulf %351, %350 : vector<2x128xf32>
    %cst_105 = arith.constant 5.000000e-01 : f32
    %353 = vector.broadcast %cst_105 : f32 to vector<2x128xf32>
    %354 = arith.addf %352, %353 : vector<2x128xf32>
    %c20_106 = arith.constant 20 : index
    %355 = memref.load %arg4[%c20_106] : memref<32xf32, #tpu.memory_space<smem>>
    %356 = vector.broadcast %355 : f32 to vector<2x128xf32>
    %357 = arith.mulf %356, %354 : vector<2x128xf32>
    %358 = arith.addf %341, %357 : vector<2x128xf32>
    %c21 = arith.constant 21 : index
    %359 = memref.load %arg2[%c21] : memref<32xf32, #tpu.memory_space<smem>>
    %360 = vector.broadcast %359 : f32 to vector<2x128xf32>
    %361 = arith.mulf %0, %360 : vector<2x128xf32>
    %c21_107 = arith.constant 21 : index
    %362 = memref.load %arg3[%c21_107] : memref<32xf32, #tpu.memory_space<smem>>
    %363 = vector.broadcast %362 : f32 to vector<2x128xf32>
    %364 = arith.addf %361, %363 : vector<2x128xf32>
    %cst_108 = arith.constant 5.000000e-01 : f32
    %365 = vector.broadcast %cst_108 : f32 to vector<2x128xf32>
    %366 = arith.mulf %365, %364 : vector<2x128xf32>
    %367 = math.tanh %366 : vector<2x128xf32>
    %cst_109 = arith.constant 5.000000e-01 : f32
    %368 = vector.broadcast %cst_109 : f32 to vector<2x128xf32>
    %369 = arith.mulf %368, %367 : vector<2x128xf32>
    %cst_110 = arith.constant 5.000000e-01 : f32
    %370 = vector.broadcast %cst_110 : f32 to vector<2x128xf32>
    %371 = arith.addf %369, %370 : vector<2x128xf32>
    %c21_111 = arith.constant 21 : index
    %372 = memref.load %arg4[%c21_111] : memref<32xf32, #tpu.memory_space<smem>>
    %373 = vector.broadcast %372 : f32 to vector<2x128xf32>
    %374 = arith.mulf %373, %371 : vector<2x128xf32>
    %375 = arith.addf %358, %374 : vector<2x128xf32>
    %c22 = arith.constant 22 : index
    %376 = memref.load %arg2[%c22] : memref<32xf32, #tpu.memory_space<smem>>
    %377 = vector.broadcast %376 : f32 to vector<2x128xf32>
    %378 = arith.mulf %0, %377 : vector<2x128xf32>
    %c22_112 = arith.constant 22 : index
    %379 = memref.load %arg3[%c22_112] : memref<32xf32, #tpu.memory_space<smem>>
    %380 = vector.broadcast %379 : f32 to vector<2x128xf32>
    %381 = arith.addf %378, %380 : vector<2x128xf32>
    %cst_113 = arith.constant 5.000000e-01 : f32
    %382 = vector.broadcast %cst_113 : f32 to vector<2x128xf32>
    %383 = arith.mulf %382, %381 : vector<2x128xf32>
    %384 = math.tanh %383 : vector<2x128xf32>
    %cst_114 = arith.constant 5.000000e-01 : f32
    %385 = vector.broadcast %cst_114 : f32 to vector<2x128xf32>
    %386 = arith.mulf %385, %384 : vector<2x128xf32>
    %cst_115 = arith.constant 5.000000e-01 : f32
    %387 = vector.broadcast %cst_115 : f32 to vector<2x128xf32>
    %388 = arith.addf %386, %387 : vector<2x128xf32>
    %c22_116 = arith.constant 22 : index
    %389 = memref.load %arg4[%c22_116] : memref<32xf32, #tpu.memory_space<smem>>
    %390 = vector.broadcast %389 : f32 to vector<2x128xf32>
    %391 = arith.mulf %390, %388 : vector<2x128xf32>
    %392 = arith.addf %375, %391 : vector<2x128xf32>
    %c23 = arith.constant 23 : index
    %393 = memref.load %arg2[%c23] : memref<32xf32, #tpu.memory_space<smem>>
    %394 = vector.broadcast %393 : f32 to vector<2x128xf32>
    %395 = arith.mulf %0, %394 : vector<2x128xf32>
    %c23_117 = arith.constant 23 : index
    %396 = memref.load %arg3[%c23_117] : memref<32xf32, #tpu.memory_space<smem>>
    %397 = vector.broadcast %396 : f32 to vector<2x128xf32>
    %398 = arith.addf %395, %397 : vector<2x128xf32>
    %cst_118 = arith.constant 5.000000e-01 : f32
    %399 = vector.broadcast %cst_118 : f32 to vector<2x128xf32>
    %400 = arith.mulf %399, %398 : vector<2x128xf32>
    %401 = math.tanh %400 : vector<2x128xf32>
    %cst_119 = arith.constant 5.000000e-01 : f32
    %402 = vector.broadcast %cst_119 : f32 to vector<2x128xf32>
    %403 = arith.mulf %402, %401 : vector<2x128xf32>
    %cst_120 = arith.constant 5.000000e-01 : f32
    %404 = vector.broadcast %cst_120 : f32 to vector<2x128xf32>
    %405 = arith.addf %403, %404 : vector<2x128xf32>
    %c23_121 = arith.constant 23 : index
    %406 = memref.load %arg4[%c23_121] : memref<32xf32, #tpu.memory_space<smem>>
    %407 = vector.broadcast %406 : f32 to vector<2x128xf32>
    %408 = arith.mulf %407, %405 : vector<2x128xf32>
    %409 = arith.addf %392, %408 : vector<2x128xf32>
    %c24 = arith.constant 24 : index
    %410 = memref.load %arg2[%c24] : memref<32xf32, #tpu.memory_space<smem>>
    %411 = vector.broadcast %410 : f32 to vector<2x128xf32>
    %412 = arith.mulf %0, %411 : vector<2x128xf32>
    %c24_122 = arith.constant 24 : index
    %413 = memref.load %arg3[%c24_122] : memref<32xf32, #tpu.memory_space<smem>>
    %414 = vector.broadcast %413 : f32 to vector<2x128xf32>
    %415 = arith.addf %412, %414 : vector<2x128xf32>
    %cst_123 = arith.constant 5.000000e-01 : f32
    %416 = vector.broadcast %cst_123 : f32 to vector<2x128xf32>
    %417 = arith.mulf %416, %415 : vector<2x128xf32>
    %418 = math.tanh %417 : vector<2x128xf32>
    %cst_124 = arith.constant 5.000000e-01 : f32
    %419 = vector.broadcast %cst_124 : f32 to vector<2x128xf32>
    %420 = arith.mulf %419, %418 : vector<2x128xf32>
    %cst_125 = arith.constant 5.000000e-01 : f32
    %421 = vector.broadcast %cst_125 : f32 to vector<2x128xf32>
    %422 = arith.addf %420, %421 : vector<2x128xf32>
    %c24_126 = arith.constant 24 : index
    %423 = memref.load %arg4[%c24_126] : memref<32xf32, #tpu.memory_space<smem>>
    %424 = vector.broadcast %423 : f32 to vector<2x128xf32>
    %425 = arith.mulf %424, %422 : vector<2x128xf32>
    %426 = arith.addf %409, %425 : vector<2x128xf32>
    %c25 = arith.constant 25 : index
    %427 = memref.load %arg2[%c25] : memref<32xf32, #tpu.memory_space<smem>>
    %428 = vector.broadcast %427 : f32 to vector<2x128xf32>
    %429 = arith.mulf %0, %428 : vector<2x128xf32>
    %c25_127 = arith.constant 25 : index
    %430 = memref.load %arg3[%c25_127] : memref<32xf32, #tpu.memory_space<smem>>
    %431 = vector.broadcast %430 : f32 to vector<2x128xf32>
    %432 = arith.addf %429, %431 : vector<2x128xf32>
    %cst_128 = arith.constant 5.000000e-01 : f32
    %433 = vector.broadcast %cst_128 : f32 to vector<2x128xf32>
    %434 = arith.mulf %433, %432 : vector<2x128xf32>
    %435 = math.tanh %434 : vector<2x128xf32>
    %cst_129 = arith.constant 5.000000e-01 : f32
    %436 = vector.broadcast %cst_129 : f32 to vector<2x128xf32>
    %437 = arith.mulf %436, %435 : vector<2x128xf32>
    %cst_130 = arith.constant 5.000000e-01 : f32
    %438 = vector.broadcast %cst_130 : f32 to vector<2x128xf32>
    %439 = arith.addf %437, %438 : vector<2x128xf32>
    %c25_131 = arith.constant 25 : index
    %440 = memref.load %arg4[%c25_131] : memref<32xf32, #tpu.memory_space<smem>>
    %441 = vector.broadcast %440 : f32 to vector<2x128xf32>
    %442 = arith.mulf %441, %439 : vector<2x128xf32>
    %443 = arith.addf %426, %442 : vector<2x128xf32>
    %c26 = arith.constant 26 : index
    %444 = memref.load %arg2[%c26] : memref<32xf32, #tpu.memory_space<smem>>
    %445 = vector.broadcast %444 : f32 to vector<2x128xf32>
    %446 = arith.mulf %0, %445 : vector<2x128xf32>
    %c26_132 = arith.constant 26 : index
    %447 = memref.load %arg3[%c26_132] : memref<32xf32, #tpu.memory_space<smem>>
    %448 = vector.broadcast %447 : f32 to vector<2x128xf32>
    %449 = arith.addf %446, %448 : vector<2x128xf32>
    %cst_133 = arith.constant 5.000000e-01 : f32
    %450 = vector.broadcast %cst_133 : f32 to vector<2x128xf32>
    %451 = arith.mulf %450, %449 : vector<2x128xf32>
    %452 = math.tanh %451 : vector<2x128xf32>
    %cst_134 = arith.constant 5.000000e-01 : f32
    %453 = vector.broadcast %cst_134 : f32 to vector<2x128xf32>
    %454 = arith.mulf %453, %452 : vector<2x128xf32>
    %cst_135 = arith.constant 5.000000e-01 : f32
    %455 = vector.broadcast %cst_135 : f32 to vector<2x128xf32>
    %456 = arith.addf %454, %455 : vector<2x128xf32>
    %c26_136 = arith.constant 26 : index
    %457 = memref.load %arg4[%c26_136] : memref<32xf32, #tpu.memory_space<smem>>
    %458 = vector.broadcast %457 : f32 to vector<2x128xf32>
    %459 = arith.mulf %458, %456 : vector<2x128xf32>
    %460 = arith.addf %443, %459 : vector<2x128xf32>
    %c27 = arith.constant 27 : index
    %461 = memref.load %arg2[%c27] : memref<32xf32, #tpu.memory_space<smem>>
    %462 = vector.broadcast %461 : f32 to vector<2x128xf32>
    %463 = arith.mulf %0, %462 : vector<2x128xf32>
    %c27_137 = arith.constant 27 : index
    %464 = memref.load %arg3[%c27_137] : memref<32xf32, #tpu.memory_space<smem>>
    %465 = vector.broadcast %464 : f32 to vector<2x128xf32>
    %466 = arith.addf %463, %465 : vector<2x128xf32>
    %cst_138 = arith.constant 5.000000e-01 : f32
    %467 = vector.broadcast %cst_138 : f32 to vector<2x128xf32>
    %468 = arith.mulf %467, %466 : vector<2x128xf32>
    %469 = math.tanh %468 : vector<2x128xf32>
    %cst_139 = arith.constant 5.000000e-01 : f32
    %470 = vector.broadcast %cst_139 : f32 to vector<2x128xf32>
    %471 = arith.mulf %470, %469 : vector<2x128xf32>
    %cst_140 = arith.constant 5.000000e-01 : f32
    %472 = vector.broadcast %cst_140 : f32 to vector<2x128xf32>
    %473 = arith.addf %471, %472 : vector<2x128xf32>
    %c27_141 = arith.constant 27 : index
    %474 = memref.load %arg4[%c27_141] : memref<32xf32, #tpu.memory_space<smem>>
    %475 = vector.broadcast %474 : f32 to vector<2x128xf32>
    %476 = arith.mulf %475, %473 : vector<2x128xf32>
    %477 = arith.addf %460, %476 : vector<2x128xf32>
    %c28 = arith.constant 28 : index
    %478 = memref.load %arg2[%c28] : memref<32xf32, #tpu.memory_space<smem>>
    %479 = vector.broadcast %478 : f32 to vector<2x128xf32>
    %480 = arith.mulf %0, %479 : vector<2x128xf32>
    %c28_142 = arith.constant 28 : index
    %481 = memref.load %arg3[%c28_142] : memref<32xf32, #tpu.memory_space<smem>>
    %482 = vector.broadcast %481 : f32 to vector<2x128xf32>
    %483 = arith.addf %480, %482 : vector<2x128xf32>
    %cst_143 = arith.constant 5.000000e-01 : f32
    %484 = vector.broadcast %cst_143 : f32 to vector<2x128xf32>
    %485 = arith.mulf %484, %483 : vector<2x128xf32>
    %486 = math.tanh %485 : vector<2x128xf32>
    %cst_144 = arith.constant 5.000000e-01 : f32
    %487 = vector.broadcast %cst_144 : f32 to vector<2x128xf32>
    %488 = arith.mulf %487, %486 : vector<2x128xf32>
    %cst_145 = arith.constant 5.000000e-01 : f32
    %489 = vector.broadcast %cst_145 : f32 to vector<2x128xf32>
    %490 = arith.addf %488, %489 : vector<2x128xf32>
    %c28_146 = arith.constant 28 : index
    %491 = memref.load %arg4[%c28_146] : memref<32xf32, #tpu.memory_space<smem>>
    %492 = vector.broadcast %491 : f32 to vector<2x128xf32>
    %493 = arith.mulf %492, %490 : vector<2x128xf32>
    %494 = arith.addf %477, %493 : vector<2x128xf32>
    %c29 = arith.constant 29 : index
    %495 = memref.load %arg2[%c29] : memref<32xf32, #tpu.memory_space<smem>>
    %496 = vector.broadcast %495 : f32 to vector<2x128xf32>
    %497 = arith.mulf %0, %496 : vector<2x128xf32>
    %c29_147 = arith.constant 29 : index
    %498 = memref.load %arg3[%c29_147] : memref<32xf32, #tpu.memory_space<smem>>
    %499 = vector.broadcast %498 : f32 to vector<2x128xf32>
    %500 = arith.addf %497, %499 : vector<2x128xf32>
    %cst_148 = arith.constant 5.000000e-01 : f32
    %501 = vector.broadcast %cst_148 : f32 to vector<2x128xf32>
    %502 = arith.mulf %501, %500 : vector<2x128xf32>
    %503 = math.tanh %502 : vector<2x128xf32>
    %cst_149 = arith.constant 5.000000e-01 : f32
    %504 = vector.broadcast %cst_149 : f32 to vector<2x128xf32>
    %505 = arith.mulf %504, %503 : vector<2x128xf32>
    %cst_150 = arith.constant 5.000000e-01 : f32
    %506 = vector.broadcast %cst_150 : f32 to vector<2x128xf32>
    %507 = arith.addf %505, %506 : vector<2x128xf32>
    %c29_151 = arith.constant 29 : index
    %508 = memref.load %arg4[%c29_151] : memref<32xf32, #tpu.memory_space<smem>>
    %509 = vector.broadcast %508 : f32 to vector<2x128xf32>
    %510 = arith.mulf %509, %507 : vector<2x128xf32>
    %511 = arith.addf %494, %510 : vector<2x128xf32>
    %c30 = arith.constant 30 : index
    %512 = memref.load %arg2[%c30] : memref<32xf32, #tpu.memory_space<smem>>
    %513 = vector.broadcast %512 : f32 to vector<2x128xf32>
    %514 = arith.mulf %0, %513 : vector<2x128xf32>
    %c30_152 = arith.constant 30 : index
    %515 = memref.load %arg3[%c30_152] : memref<32xf32, #tpu.memory_space<smem>>
    %516 = vector.broadcast %515 : f32 to vector<2x128xf32>
    %517 = arith.addf %514, %516 : vector<2x128xf32>
    %cst_153 = arith.constant 5.000000e-01 : f32
    %518 = vector.broadcast %cst_153 : f32 to vector<2x128xf32>
    %519 = arith.mulf %518, %517 : vector<2x128xf32>
    %520 = math.tanh %519 : vector<2x128xf32>
    %cst_154 = arith.constant 5.000000e-01 : f32
    %521 = vector.broadcast %cst_154 : f32 to vector<2x128xf32>
    %522 = arith.mulf %521, %520 : vector<2x128xf32>
    %cst_155 = arith.constant 5.000000e-01 : f32
    %523 = vector.broadcast %cst_155 : f32 to vector<2x128xf32>
    %524 = arith.addf %522, %523 : vector<2x128xf32>
    %c30_156 = arith.constant 30 : index
    %525 = memref.load %arg4[%c30_156] : memref<32xf32, #tpu.memory_space<smem>>
    %526 = vector.broadcast %525 : f32 to vector<2x128xf32>
    %527 = arith.mulf %526, %524 : vector<2x128xf32>
    %528 = arith.addf %511, %527 : vector<2x128xf32>
    %c31 = arith.constant 31 : index
    %529 = memref.load %arg2[%c31] : memref<32xf32, #tpu.memory_space<smem>>
    %530 = vector.broadcast %529 : f32 to vector<2x128xf32>
    %531 = arith.mulf %0, %530 : vector<2x128xf32>
    %c31_157 = arith.constant 31 : index
    %532 = memref.load %arg3[%c31_157] : memref<32xf32, #tpu.memory_space<smem>>
    %533 = vector.broadcast %532 : f32 to vector<2x128xf32>
    %534 = arith.addf %531, %533 : vector<2x128xf32>
    %cst_158 = arith.constant 5.000000e-01 : f32
    %535 = vector.broadcast %cst_158 : f32 to vector<2x128xf32>
    %536 = arith.mulf %535, %534 : vector<2x128xf32>
    %537 = math.tanh %536 : vector<2x128xf32>
    %cst_159 = arith.constant 5.000000e-01 : f32
    %538 = vector.broadcast %cst_159 : f32 to vector<2x128xf32>
    %539 = arith.mulf %538, %537 : vector<2x128xf32>
    %cst_160 = arith.constant 5.000000e-01 : f32
    %540 = vector.broadcast %cst_160 : f32 to vector<2x128xf32>
    %541 = arith.addf %539, %540 : vector<2x128xf32>
    %c31_161 = arith.constant 31 : index
    %542 = memref.load %arg4[%c31_161] : memref<32xf32, #tpu.memory_space<smem>>
    %543 = vector.broadcast %542 : f32 to vector<2x128xf32>
    %544 = arith.mulf %543, %541 : vector<2x128xf32>
    %545 = arith.addf %528, %544 : vector<2x128xf32>
    %c0_162 = arith.constant 0 : index
    %546 = memref.load %arg5[%c0_162] : memref<1xf32, #tpu.memory_space<smem>>
    %547 = vector.broadcast %546 : f32 to vector<2x128xf32>
    %548 = arith.addf %545, %547 : vector<2x128xf32>
    %c0_163 = arith.constant 0 : index
    %c0_164 = arith.constant 0 : index
    %549 = vector.load %arg6[%c0_163, %c0_164] : memref<2x128xf32, #tpu.memory_space<vmem>>, vector<2x128xf32>
    tpu.vector_store %arg6[%c0_163, %c0_164], %548 {strides = array<i32>} : memref<2x128xf32, #tpu.memory_space<vmem>>, vector<2x128xf32>,
    return
  }
  func.func @transform_0(%arg0: i32) -> (i32, i32) {
    %c0_i32 = arith.constant 0 : i32
    %c0_i32_0 = arith.constant 0 : i32
    return %arg0, %c0_i32 : i32, i32
  }
  func.func @transform_1(%arg0: i32) -> i32 {
    %c0_i32 = arith.constant 0 : i32
    %c0_i32_0 = arith.constant 0 : i32
    return %c0_i32 : i32
  }
  func.func @transform_2(%arg0: i32) -> i32 {
    %c0_i32 = arith.constant 0 : i32
    %c0_i32_0 = arith.constant 0 : i32
    return %c0_i32 : i32
  }
  func.func @transform_3(%arg0: i32) -> i32 {
    %c0_i32 = arith.constant 0 : i32
    %c0_i32_0 = arith.constant 0 : i32
    return %c0_i32 : i32
  }
  func.func @transform_4(%arg0: i32) -> i32 {
    %c0_i32 = arith.constant 0 : i32
    %c0_i32_0 = arith.constant 0 : i32
    return %c0_i32 : i32
  }
  func.func @transform_5(%arg0: i32) -> (i32, i32) {
    %c0_i32 = arith.constant 0 : i32
    %c0_i32_0 = arith.constant 0 : i32
    return %arg0, %c0_i32 : i32, i32
  }
}

</mosaic_0001>

<bundles_post_ra>
// kernel: tpu_custom_call.1
= control target key start
LH: loop header
LB: loop body
LE: loop exit
PB: predicated region body
PF: predicated region fallthrough
CT: control target
= control target key end

     0   :  { %11 = vsyncpa [#allocation5], 0  ;;  %s1124_s0 = inlined_call_operand.vmem [shape: f32[2,128], index: 0, kind: input, shape index: {}]   ;;  %s1125_s1 = inlined_call_operand.vmem [shape: f32[32], index: 1, kind: input, shape index: {}]   ;;  %s1126_s2 = inlined_call_operand.vmem [shape: f32[32], index: 2, kind: input, shape index: {}]   ;;  %s1127_s3 = inlined_call_operand.vmem [shape: f32[32], index: 3, kind: input, shape index: {}]   ;;  %s1128_s4 = inlined_call_operand.<no memory space> [shape: f32[1], index: 4, kind: input, shape index: {}]   ;;  %s1129_s5 = inlined_call_operand.hbm [shape: f32[2,128], index: 5, kind: output, shape index: {}]  }
   0x1   :  { %12 = vsyncpa [#allocation7], 0  ;;  %s32_s20 = sshll.u32 %s1126_s2, 4  ;;  %s33_s20 = int_to_ptr.vmem [resolvable:$true] %s32_s20 }
   0x2   :  { %13 = vsyncpa [#allocation4], 0  ;;  %s22_s23 = sshll.u32 %s1125_s1, 4  ;;  %s688_s24 = scalar_lea.vmem %s33_s20, 16  ;;  %s23_s23 = int_to_ptr.vmem [resolvable:$true] %s22_s23 }
   0x3   :  { %p689_p0 = scmp.ne.s32.totalorder %s33_s20, %s688_s24  ;;  %p693_p1 = scmp.lt.s32.totalorder %s33_s20, %s33_s20 }
   0x4   :  { %p694_p2 = scmp.lt.s32.totalorder %s688_s24, %s688_s24 }
   0x6   :  { %p695_p3 = por %p694_p2, %p693_p1 }
   0x8   :  { %p696_p4 = pnand %p695_p3, %p689_p0 }
   0xa   :  { %699 = shalt.err (!%p696_p4)
}
   0xb   :  { %s752_s25 = smov [#allocation6]   ;;  %s700_s26 = scalar_lea.vmem %s23_s23, 16 }
   0xc   :  { %35 = dma.vmem_to_smem %s33_s20, 16, %s752_s25, [#allocation7]  }
   0xd   :  { %p701_p5 = scmp.ne.s32.totalorder %s23_s23, %s700_s26  ;;  %p705_p6 = scmp.lt.s32.totalorder %s23_s23, %s23_s23 }
   0xe   :  { %p706_p7 = scmp.lt.s32.totalorder %s700_s26, %s700_s26 }
  0x10   :  { %p707_p8 = por %p706_p7, %p705_p6 }
  0x12   :  { %p708_p9 = pnand %p707_p8, %p701_p5 }
  0x14   :  { %711 = shalt.err (!%p708_p9)
}
  0x15   :  { %s753_s2 = smov [#allocation3]   ;;  %s42_s28 = sshll.u32 %s1127_s3, 4  ;;  %s43_s28 = int_to_ptr.vmem [resolvable:$true] %s42_s28 }
  0x16   :  { %25 = dma.vmem_to_smem %s23_s23, 16, %s753_s2, [#allocation5]  }
  0x17   :  { %s712_s29 = scalar_lea.vmem %s43_s28, 16  ;;  %p717_p11 = scmp.lt.s32.totalorder %s43_s28, %s43_s28 }
  0x18   :  { %p713_p10 = scmp.ne.s32.totalorder %s43_s28, %s712_s29  ;;  %p718_p12 = scmp.lt.s32.totalorder %s712_s29, %s712_s29 }
  0x1a   :  { %p719_p13 = por %p718_p12, %p717_p11 }
  0x1c   :  { %p720_p0 = pnand %p719_p13, %p713_p10 }
  0x1e   :  { %723 = shalt.err (!%p720_p0)
}
  0x1f   :  { %s754_s30 = smov [#allocation8]  }
  0x20   :  { %45 = dma.vmem_to_smem %s43_s28, 16, %s754_s30, [#allocation7]  }
  0x21   :  { %746 = dma.done.wait [#allocation5], 16  }
  0x22   :  { %747 = vsyncadd [#allocation5], 4294967280 }
  0x23   :  { %748 = dma.done.wait [#allocation7], 32  }
  0x24   :  { %749 = vsyncadd [#allocation7], 4294967264 }
  0x25   :  { %57 = sfence }
  0x26   :  { %s59_s6 = sld [smem:[#allocation3]]  ;;  %s527_s8 = sld [smem:[#allocation3 + $0x1]]  ;;  %v800_v0 = vld [vmem:[%s1124_s0] sm:$0x3] }
  0x27   :  { %s62_s7 = sld [smem:[#allocation6]]  ;;  %s528_s9 = sld [smem:[#allocation6 + $0x1]] }
  0x28   :  { %s530_s3 = sld [smem:[#allocation3 + $0x2]]  ;;  %s533_s13 = sld [smem:[#allocation3 + $0x3]] }
  0x29   :  { %s795_s10 = sld [smem:[#allocation6 + $0x2]]  ;;  %s802_s14 = sld [smem:[#allocation8]] }
  0x2a   :  { %s804_s15 = sld [smem:[#allocation6 + $0x3]]  ;;  %s806_s16 = sld [smem:[#allocation3 + $0x4]] }
  0x2b   :  { %s808_s17 = sld [smem:[#allocation6 + $0x4]]  ;;  %s811_s18 = sld [smem:[#allocation8 + $0x1]] }
  0x2c   :  { %v60_v1 = vstv %s59_s6  ;;  %v74_v4 = vstv %s527_s8  ;;  %s813_s19 = sld [smem:[#allocation3 + $0x5]]  ;;  %s816_s0 = sld [smem:[#allocation8 + $0x2]] }
  0x2d   :  { %v63_v2 = vstv %s62_s7  ;;  %v61_v3 = vmul.f32 %v60_v1, %v800_v0  ;;  %v75_v5 = vmul.f32 %v74_v4, %v800_v0  ;;  %v77_v6 = vstv %s528_s9  ;;  %s818_s20 = sld [smem:[#allocation6 + $0x5]]  ;;  %s821_s21 = sld [smem:[#allocation3 + $0x6]] }
  0x2e   :  { %v88_v8 = vstv %s530_s3  ;;  %s823_s22 = sld [smem:[#allocation6 + $0x6]]  ;;  %v102_v12 = vstv %s533_s13  ;;  %s826_s23 = sld [smem:[#allocation8 + $0x3]] }
  0x2f   :  { %v64_v7 = vadd.f32 %v63_v2, %v61_v3  ;;  %v91_v9 = vstv %s795_s10  ;;  %v78_v10 = vadd.f32 %v77_v6, %v75_v5  ;;  %v89_v11 = vmul.f32 %v88_v8, %v800_v0  ;;  %s828_s24 = sld [smem:[#allocation3 + $0x7]]  ;;  %s832_s25 = sld [smem:[#allocation8 + $0x4]] }
  0x30   :  { %v103_v14 = vmul.f32 %v102_v12, %v800_v0  ;;  %v105_v15 = vstv %s804_s15  ;;  %s834_s26 = sld [smem:[#allocation6 + $0x7]]  ;;  %v116_v18 = vstv %s806_s16  ;;  %s838_s2 = sld [smem:[#allocation3 + $0x8]]  ;;  %v70_v20 = vstv %s802_s14 }
  0x31   :  { %v65_v13 = vmul.f32 0.5, %v64_v7  ;;  %v79_v16 = vmul.f32 0.5, %v78_v10  ;;  %v92_v17 = vadd.f32 %v91_v9, %v89_v11  ;;  %v119_v19 = vstv %s808_s17  ;;  %s840_s1 = sld [smem:[#allocation6 + $0x8]]  ;;  %s844_s27 = sld [smem:[#allocation3 + $0x9]] }
  0x32   :  { %v106_v21 = vadd.f32 %v105_v15, %v103_v14  ;;  %v117_v22 = vmul.f32 %v116_v18, %v800_v0  ;;  %v130_v24 = vstv %s813_s19  ;;  %s848_s28 = sld [smem:[#allocation8 + $0x5]]  ;;  %s850_s29 = sld [smem:[#allocation6 + $0x9]]  ;;  %v84_v26 = vstv %s811_s18 }
  0x33   :  { %624 = vtanh.f32 %v65_v13  ;;  %v93_v23 = vmul.f32 0.5, %v92_v17  ;;  %v133_v25 = vstv %s818_s20  ;;  %v131_v29 = vmul.f32 %v130_v24, %v800_v0  ;;  %s854_s30 = sld [smem:[#allocation3 + $0xa]]  ;;  %s859_s6 = sld [smem:[#allocation8 + $0x6]] }
  0x34   :  { %626 = vtanh.f32 %v79_v16  ;;  %v107_v27 = vmul.f32 0.5, %v106_v21  ;;  %v120_v28 = vadd.f32 %v119_v19, %v117_v22  ;;  %v98_v30 = vstv %s816_s0  ;;  %s861_s7 = sld [smem:[#allocation6 + $0xa]]  ;;  %s868_s8 = sld [smem:[#allocation3 + $0xb]] }
  0x35   :  { %628 = vtanh.f32 %v93_v23  ;;  %v144_v31 = vstv %s821_s21  ;;  %v147_v32 = vstv %s823_s22  ;;  %v134_v34 = vadd.f32 %v133_v25, %v131_v29  ;;  %s870_s9 = sld [smem:[#allocation6 + $0xb]]  ;;  %s874_s3 = sld [smem:[#allocation8 + $0x7]] }
  0x36   :  { %630 = vtanh.f32 %v107_v27  ;;  %v121_v33 = vmul.f32 0.5, %v120_v28  ;;  %v145_v35 = vmul.f32 %v144_v31, %v800_v0  ;;  %v112_v36 = vstv %s826_s23  ;;  %s880_s10 = sld [smem:[#allocation3 + $0xc]]  ;;  %s885_s11 = sld [smem:[#allocation8 + $0x8]] }
  0x37   :  { %v158_v37 = vstv %s828_s24  ;;  %v161_v38 = vstv %s834_s26  ;;  %v172_v39 = vstv %s838_s2  ;;  %v135_v40 = vmul.f32 0.5, %v134_v34  ;;  %s888_s12 = sld [smem:[#allocation6 + $0xc]]  ;;  %s892_s13 = sld [smem:[#allocation3 + $0xd]] }
  0x38   :  { %632 = vtanh.f32 %v121_v33  ;;  %v148_v41 = vadd.f32 %v147_v32, %v145_v35  ;;  %v159_v42 = vmul.f32 %v158_v37, %v800_v0  ;;  %v126_v43 = vstv %s832_s25  ;;  %s894_s15 = sld [smem:[#allocation6 + $0xd]]  ;;  %s898_s16 = sld [smem:[#allocation8 + $0x9]] }
  0x39   :  { %v173_v44 = vmul.f32 %v172_v39, %v800_v0  ;;  %v175_v45 = vstv %s840_s1  ;;  %v186_v46 = vstv %s844_s27  ;;  %634 = vtanh.f32 %v135_v40  ;;  %s904_s17 = sld [smem:[#allocation3 + $0xe]]  ;;  %s918_s18 = sld [smem:[#allocation8 + $0xa]] }
  0x3a   :  { %v149_v47 = vmul.f32 0.5, %v148_v41  ;;  %v162_v48 = vadd.f32 %v161_v38, %v159_v42  ;;  %v187_v49 = vmul.f32 %v186_v46, %v800_v0  ;;  %v140_v50 = vstv %s848_s28  ;;  %s914_s14 = sld [smem:[#allocation6 + $0xe]]  ;;  %s924_s19 = sld [smem:[#allocation3 + $0xf]] }
  0x3b   :  { %v176_v51 = vadd.f32 %v175_v45, %v173_v44  ;;  %v189_v52 = vstv %s850_s29  ;;  %v200_v53 = vstv %s854_s30  ;;  %v154_v60 = vstv %s859_s6  ;;  %s928_s0 = sld [smem:[#allocation6 + $0xf]]  ;;  %s933_s20 = sld [smem:[#allocation3 + $0x10]] }
  0x3c   :  { %636 = vtanh.f32 %v149_v47  ;;  %v163_v55 = vmul.f32 0.5, %v162_v48  ;;  %v190_v56 = vadd.f32 %v189_v52, %v187_v49  ;;  %v201_v57 = vmul.f32 %v200_v53, %v800_v0  ;;  %s935_s21 = sld [smem:[#allocation6 + $0x10]]  ;;  %s937_s22 = sld [smem:[#allocation8 + $0xb]] }
  0x3d   :  { %v625_v54 = vpop.eup %624  ;;  %v177_v61 = vmul.f32 0.5, %v176_v51  ;;  %v203_v62 = vstv %s861_s7  ;;  %v214_v5 = vstv %s868_s8  ;;  %v217_v6 = vstv %s870_s9  ;;  %s939_s23 = sld [smem:[#allocation8 + $0xc]]  ;;  %s944_s24 = sld [smem:[#allocation3 + $0x11]] }
  0x3e   :  { %v627_v58 = vpop.eup %626  ;;  %v67_v59 = vmul.f32 0.5, %v625_v54  ;;  %638 = vtanh.f32 %v163_v55  ;;  %v191_v1 = vmul.f32 0.5, %v190_v56  ;;  %v204_v2 = vadd.f32 %v203_v62, %v201_v57  ;;  %s946_s25 = sld [smem:[#allocation6 + $0x11]]  ;;  %s951_s26 = sld [smem:[#allocation3 + $0x12]] }
  0x3f   :  { %v81_v63 = vmul.f32 0.5, %v627_v58  ;;  %v629_v3 = vpop.eup %628  ;;  %640 = vtanh.f32 %v177_v61  ;;  %v168_v13 = vstv %s874_s3  ;;  %v215_v14 = vmul.f32 %v214_v5, %v800_v0  ;;  %s953_s2 = sld [smem:[#allocation6 + $0x12]]  ;;  %s956_s1 = sld [smem:[#allocation8 + $0xd]] }
  0x40   :  { %v68_v4 = vadd.f32 0.5, %v67_v59  ;;  %v631_v7 = vpop.eup %630  ;;  %v95_v9 = vmul.f32 0.5, %v629_v3  ;;  %642 = vtanh.f32 %v191_v1  ;;  %v205_v10 = vmul.f32 0.5, %v204_v2  ;;  %s961_s27 = sld [smem:[#allocation3 + $0x13]]  ;;  %s965_s29 = sld [smem:[#allocation8 + $0xe]] }
  0x41   :  { %v82_v8 = vadd.f32 0.5, %v81_v63  ;;  %v109_v12 = vmul.f32 0.5, %v631_v7  ;;  %v228_v18 = vstv %s880_s10  ;;  %v218_v22 = vadd.f32 %v217_v6, %v215_v14  ;;  %s963_s28 = sld [smem:[#allocation6 + $0x13]]  ;;  %s970_s30 = sld [smem:[#allocation3 + $0x14]] }
  0x42   :  { %v71_v11 = vmul.f32 %v70_v20, %v68_v4  ;;  %v633_v15 = vpop.eup %632  ;;  %v96_v17 = vadd.f32 0.5, %v95_v9  ;;  %644 = vtanh.f32 %v205_v10  ;;  %v229_v20 = vmul.f32 %v228_v18, %v800_v0  ;;  %s972_s6 = sld [smem:[#allocation6 + $0x14]]  ;;  %s978_s7 = sld [smem:[#allocation8 + $0xf]] }
  0x43   :  { %v85_v16 = vmul.f32 %v84_v26, %v82_v8  ;;  %v110_v19 = vadd.f32 0.5, %v109_v12  ;;  %v123_v21 = vmul.f32 0.5, %v633_v15  ;;  %v635_v23 = vpop.eup %634  ;;  %v182_v27 = vstv %s885_s11  ;;  %s983_s8 = sld [smem:[#allocation3 + $0x15]]  ;;  %s987_s3 = sld [smem:[#allocation8 + $0x10]] }
  0x44   :  { %v99_v25 = vmul.f32 %v98_v30, %v96_v17  ;;  %v231_v28 = vstv %s888_s12  ;;  %v137_v31 = vmul.f32 0.5, %v635_v23  ;;  %v219_v32 = vmul.f32 0.5, %v218_v22  ;;  %s985_s9 = sld [smem:[#allocation6 + $0x15]]  ;;  %s991_s10 = sld [smem:[#allocation3 + $0x16]] }
  0x45   :  { %v86_v24 = vadd.f32 %v85_v16, %v71_v11  ;;  %v113_v26 = vmul.f32 %v112_v36, %v110_v19  ;;  %v124_v29 = vadd.f32 0.5, %v123_v21  ;;  %v232_v35 = vadd.f32 %v231_v28, %v229_v20  ;;  %s993_s11 = sld [smem:[#allocation6 + $0x16]]  ;;  %s997_s12 = sld [smem:[#allocation8 + $0x11]] }
  0x46   :  { %v637_v33 = vpop.eup %636  ;;  %v242_v37 = vstv %s892_s13  ;;  %v245_v38 = vstv %s894_s15  ;;  %v138_v39 = vadd.f32 0.5, %v137_v31  ;;  %646 = vtanh.f32 %v219_v32  ;;  %s999_s13 = sld [smem:[#allocation3 + $0x17]] }
  0x47   :  { %v100_v34 = vadd.f32 %v99_v25, %v86_v24  ;;  %v127_v30 = vmul.f32 %v126_v43, %v124_v29  ;;  %v151_v40 = vmul.f32 0.5, %v637_v33  ;;  %v196_v42 = vstv %s898_s16  ;;  %s1005_s15 = sld [smem:[#allocation6 + $0x17]]  ;;  %s1008_s16 = sld [smem:[#allocation8 + $0x12]] }
  0x48   :  { %v639_v36 = vpop.eup %638  ;;  %v233_v44 = vmul.f32 0.5, %v232_v35  ;;  %v243_v45 = vmul.f32 %v242_v37, %v800_v0  ;;  %v141_v47 = vmul.f32 %v140_v50, %v138_v39  ;;  %v256_v43 = vstv %s904_s17  ;;  %s1011_s17 = sld [smem:[#allocation3 + $0x18]] }
  0x49   :  { %v114_v41 = vadd.f32 %v113_v26, %v100_v34  ;;  %v641_v46 = vpop.eup %640  ;;  %v152_v48 = vadd.f32 0.5, %v151_v40  ;;  %v165_v49 = vmul.f32 0.5, %v639_v36  ;;  %v257_v57 = vmul.f32 %v256_v43, %v800_v0 }
  0x4a   :  { %v643_v51 = vpop.eup %642  ;;  %v179_v53 = vmul.f32 0.5, %v641_v46  ;;  %648 = vtanh.f32 %v233_v44  ;;  %v246_v54 = vadd.f32 %v245_v38, %v243_v45  ;;  %v259_v63 = vstv %s914_s14  ;;  %s1015_s14 = sld [smem:[#allocation8 + $0x13]] }
  0x4b   :  { %v128_v52 = vadd.f32 %v127_v30, %v114_v41  ;;  %v155_v50 = vmul.f32 %v154_v60, %v152_v48  ;;  %v166_v55 = vadd.f32 0.5, %v165_v49  ;;  %v193_v56 = vmul.f32 0.5, %v643_v51 }
  0x4c   :  { %v645_v58 = vpop.eup %644  ;;  %v180_v61 = vadd.f32 0.5, %v179_v53  ;;  %v247_v62 = vmul.f32 0.5, %v246_v54  ;;  %v260_v3 = vadd.f32 %v259_v63, %v257_v57  ;;  %v210_v6 = vstv %s918_s18  ;;  %s1018_s18 = sld [smem:[#allocation6 + $0x18]] }
  0x4d   :  { %v142_v59 = vadd.f32 %v141_v47, %v128_v52  ;;  %v169_v1 = vmul.f32 %v168_v13, %v166_v55  ;;  %v194_v2 = vadd.f32 0.5, %v193_v56  ;;  %v207_v60 = vmul.f32 0.5, %v645_v58 }
  0x4e   :  { %v183_v5 = vmul.f32 %v182_v27, %v180_v61  ;;  %650 = vtanh.f32 %v247_v62  ;;  %v261_v8 = vmul.f32 0.5, %v260_v3  ;;  %v270_v9 = vstv %s924_s19  ;;  %s1023_s19 = sld [smem:[#allocation3 + $0x19]] }
  0x4f   :  { %v156_v4 = vadd.f32 %v155_v50, %v142_v59  ;;  %v208_v7 = vadd.f32 0.5, %v207_v60  ;;  %v197_v11 = vmul.f32 %v196_v42, %v194_v2  ;;  %v271_v12 = vmul.f32 %v270_v9, %v800_v0 }
  0x50   :  { %v273_v13 = vstv %s928_s0  ;;  %v647_v14 = vpop.eup %646  ;;  %652 = vtanh.f32 %v261_v8  ;;  %v284_v16 = vstv %s933_s20  ;;  %v287_v17 = vstv %s935_s21  ;;  %s1028_s0 = sld [smem:[#allocation6 + $0x19]]  ;;  %s1030_s20 = sld [smem:[#allocation8 + $0x14]] }
  0x51   :  { %v170_v10 = vadd.f32 %v169_v1, %v156_v4  ;;  %v211_v15 = vmul.f32 %v210_v6, %v208_v7  ;;  %v221_v19 = vmul.f32 0.5, %v647_v14  ;;  %v274_v21 = vadd.f32 %v273_v13, %v271_v12  ;;  %s1033_s21 = sld [smem:[#allocation3 + $0x1a]] }
  0x52   :  { %v285_v22 = vmul.f32 %v284_v16, %v800_v0  ;;  %v224_v20 = vstv %s937_s22  ;;  %v238_v23 = vstv %s939_s23  ;;  %v298_v24 = vstv %s944_s24  ;;  %s1037_s22 = sld [smem:[#allocation8 + $0x15]]  ;;  %s1040_s23 = sld [smem:[#allocation6 + $0x1a]] }
  0x53   :  { %v184_v18 = vadd.f32 %v183_v5, %v170_v10  ;;  %v301_v25 = vstv %s946_s25  ;;  %v222_v26 = vadd.f32 0.5, %v221_v19  ;;  %v275_v29 = vmul.f32 0.5, %v274_v21  ;;  %s1042_s24 = sld [smem:[#allocation8 + $0x16]]  ;;  %s1047_s25 = sld [smem:[#allocation3 + $0x1b]] }
  0x54   :  { %v649_v27 = vpop.eup %648  ;;  %v288_v31 = vadd.f32 %v287_v17, %v285_v22  ;;  %v299_v33 = vmul.f32 %v298_v24, %v800_v0  ;;  %v312_v34 = vstv %s951_s26  ;;  %v315_v35 = vstv %s953_s2  ;;  %s1049_s26 = sld [smem:[#allocation6 + $0x1b]]  ;;  %s1052_s2 = sld [smem:[#allocation3 + $0x1c]] }
  0x55   :  { %v198_v28 = vadd.f32 %v197_v11, %v184_v18  ;;  %v235_v32 = vmul.f32 0.5, %v649_v27  ;;  %v225_v38 = vmul.f32 %v224_v20, %v222_v26  ;;  %654 = vtanh.f32 %v275_v29 }
  0x56   :  { %v289_v30 = vmul.f32 0.5, %v288_v31  ;;  %v252_v40 = vstv %s956_s1  ;;  %v302_v36 = vadd.f32 %v301_v25, %v299_v33  ;;  %v313_v41 = vmul.f32 %v312_v34, %v800_v0  ;;  %s1054_s1 = sld [smem:[#allocation6 + $0x1c]] }
  0x57   :  { %v212_v37 = vadd.f32 %v211_v15, %v198_v28  ;;  %v236_v39 = vadd.f32 0.5, %v235_v32  ;;  %v326_v45 = vstv %s961_s27  ;;  %v329_v46 = vstv %s963_s28  ;;  %s1059_s27 = sld [smem:[#allocation8 + $0x17]]  ;;  %s1065_s28 = sld [smem:[#allocation3 + $0x1d]] }
  0x58   :  { %v651_v42 = vpop.eup %650  ;;  %656 = vtanh.f32 %v289_v30  ;;  %v303_v49 = vmul.f32 0.5, %v302_v36  ;;  %v316_v43 = vadd.f32 %v315_v35, %v313_v41  ;;  %v266_v51 = vstv %s965_s29  ;;  %s1067_s29 = sld [smem:[#allocation6 + $0x1d]] }
  0x59   :  { %v226_v44 = vadd.f32 %v225_v38, %v212_v37  ;;  %v239_v47 = vmul.f32 %v238_v23, %v236_v39  ;;  %v249_v48 = vmul.f32 0.5, %v651_v42  ;;  %v327_v52 = vmul.f32 %v326_v45, %v800_v0 }
  0x5a   :  { %v340_v53 = vstv %s970_s30  ;;  %v343_v54 = vstv %s972_s6  ;;  %v653_v50 = vpop.eup %652  ;;  %658 = vtanh.f32 %v303_v49  ;;  %v317_v57 = vmul.f32 0.5, %v316_v43  ;;  %s1070_s30 = sld [smem:[#allocation8 + $0x18]]  ;;  %s1074_s6 = sld [smem:[#allocation3 + $0x1e]] }
  0x5b   :  { %v240_v55 = vadd.f32 %v239_v47, %v226_v44  ;;  %v250_v56 = vadd.f32 0.5, %v249_v48  ;;  %v263_v58 = vmul.f32 0.5, %v653_v50  ;;  %v280_v59 = vstv %s978_s7  ;;  %s1079_s7 = sld [smem:[#allocation6 + $0x1e]] }
  0x5c   :  { %v330_v61 = vadd.f32 %v329_v46, %v327_v52  ;;  %v341_v62 = vmul.f32 %v340_v53, %v800_v0  ;;  %660 = vtanh.f32 %v317_v57  ;;  %v354_v1 = vstv %s983_s8  ;;  %s1082_s8 = sld [smem:[#allocation3 + $0x1f]] }
  0x5d   :  { %v253_v63 = vmul.f32 %v252_v40, %v250_v56  ;;  %v357_v2 = vstv %s985_s9  ;;  %v264_v60 = vadd.f32 0.5, %v263_v58  ;;  %v355_v5 = vmul.f32 %v354_v1, %v800_v0  ;;  %s1084_s9 = sld [smem:[#allocation6 + $0x1f]] }
  0x5e   :  { %v331_v3 = vmul.f32 0.5, %v330_v61  ;;  %v344_v4 = vadd.f32 %v343_v54, %v341_v62  ;;  %v294_v7 = vstv %s987_s3  ;;  %v368_v8 = vstv %s991_s10  ;;  %s1087_s3 = sld [smem:[#allocation8 + $0x19]]  ;;  %s1093_s10 = sld [smem:[#allocation8 + $0x1a]] }
  0x5f   :  { %v254_v6 = vadd.f32 %v253_v63, %v240_v55  ;;  %v371_v9 = vstv %s993_s11  ;;  %v655_v10 = vpop.eup %654  ;;  %v267_v11 = vmul.f32 %v266_v51, %v264_v60  ;;  %v358_v13 = vadd.f32 %v357_v2, %v355_v5  ;;  %s1100_s11 = sld [smem:[#allocation8 + $0x1b]] }
  0x60   :  { %662 = vtanh.f32 %v331_v3  ;;  %v345_v12 = vmul.f32 0.5, %v344_v4  ;;  %v277_v14 = vmul.f32 0.5, %v655_v10  ;;  %v308_v15 = vstv %s997_s12  ;;  %s1103_s12 = sld [smem:[#allocation8 + $0x1c]] }
  0x61   :  { %v369_v16 = vmul.f32 %v368_v8, %v800_v0  ;;  %v382_v17 = vstv %s999_s13  ;;  %v268_v19 = vadd.f32 %v267_v11, %v254_v6  ;;  %v359_v21 = vmul.f32 0.5, %v358_v13  ;;  %s613_s13 = sld [smem:[#allocation8 + $0x1d]] }
  0x62   :  { %v657_v18 = vpop.eup %656  ;;  %664 = vtanh.f32 %v345_v12  ;;  %v383_v22 = vmul.f32 %v382_v17, %v800_v0  ;;  %v278_v20 = vadd.f32 0.5, %v277_v14  ;;  %v385_v25 = vstv %s1005_s15  ;;  %s616_s15 = sld [smem:[#allocation8 + $0x1e]] }
  0x63   :  { %v291_v23 = vmul.f32 0.5, %v657_v18  ;;  %v372_v24 = vadd.f32 %v371_v9, %v369_v16  ;;  %v322_v27 = vstv %s1008_s16  ;;  %666 = vtanh.f32 %v359_v21  ;;  %s619_s16 = sld [smem:[#allocation8 + $0x1f]] }
  0x64   :  { %v386_v28 = vadd.f32 %v385_v25, %v383_v22  ;;  %v396_v26 = vstv %s1011_s17  ;;  %v659_v29 = vpop.eup %658  ;;  %v281_v31 = vmul.f32 %v280_v59, %v278_v20  ;;  %v336_v37 = vstv %s1015_s14 }
  0x65   :  { %v292_v32 = vadd.f32 0.5, %v291_v23  ;;  %v373_v33 = vmul.f32 0.5, %v372_v24  ;;  %v397_v34 = vmul.f32 %v396_v26, %v800_v0  ;;  %v305_v35 = vmul.f32 0.5, %v659_v29 }
  0x66   :  { %v387_v38 = vmul.f32 0.5, %v386_v28  ;;  %v399_v30 = vstv %s1018_s18  ;;  %v661_v39 = vpop.eup %660  ;;  %v282_v40 = vadd.f32 %v281_v31, %v268_v19  ;;  %v410_v45 = vstv %s1023_s19  ;;  %s755_s18 = smov [#allocation9]  }
  0x67   :  { %v295_v36 = vmul.f32 %v294_v7, %v292_v32  ;;  %668 = vtanh.f32 %v373_v33  ;;  %v400_v41 = vadd.f32 %v399_v30, %v397_v34  ;;  %v306_v42 = vadd.f32 0.5, %v305_v35  ;;  %s517_s19 = sshll.u32 %s755_s18, 4  ;;  %s518_s19 = int_to_ptr.vmem [resolvable:$true] %s517_s19 }
  0x68   :  { %v319_v44 = vmul.f32 0.5, %v661_v39  ;;  %670 = vtanh.f32 %v387_v38  ;;  %v411_v48 = vmul.f32 %v410_v45, %v800_v0  ;;  %v413_v49 = vstv %s1028_s0  ;;  %s724_s0 = scalar_lea.vmem %s518_s19, 32  ;;  %p729_p2 = scmp.lt.s32.totalorder %s518_s19, %s518_s19 }
  0x69   :  { %v296_v46 = vadd.f32 %v295_v36, %v282_v40  ;;  %v401_v47 = vmul.f32 0.5, %v400_v41  ;;  %v309_v51 = vmul.f32 %v308_v15, %v306_v42  ;;  %v350_v53 = vstv %s1030_s20  ;;  %p725_p1 = scmp.ne.s32.totalorder %s518_s19, %s724_s0  ;;  %p730_p3 = scmp.lt.s32.totalorder %s724_s0, %s724_s0 }
  0x6a   :  { %v663_v43 = vpop.eup %662  ;;  %v320_v52 = vadd.f32 0.5, %v319_v44  ;;  %v424_v54 = vstv %s1033_s21  ;;  %v414_v55 = vadd.f32 %v413_v49, %v411_v48  ;;  %v364_v61 = vstv %s1037_s22 }
  0x6b   :  { %v333_v50 = vmul.f32 0.5, %v663_v43  ;;  %672 = vtanh.f32 %v401_v47  ;;  %v425_v56 = vmul.f32 %v424_v54, %v800_v0  ;;  %v310_v58 = vadd.f32 %v309_v51, %v296_v46  ;;  %p731_p4 = por %p730_p3, %p729_p2 }
  0x6c   :  { %v665_v57 = vpop.eup %664  ;;  %v323_v59 = vmul.f32 %v322_v27, %v320_v52  ;;  %v427_v62 = vstv %s1040_s23  ;;  %v415_v2 = vmul.f32 0.5, %v414_v55  ;;  %v378_v5 = vstv %s1042_s24 }
  0x6d   :  { %v334_v63 = vadd.f32 0.5, %v333_v50  ;;  %v347_v1 = vmul.f32 0.5, %v665_v57  ;;  %v428_v60 = vadd.f32 %v427_v62, %v425_v56  ;;  %v667_v3 = vpop.eup %666  ;;  %v438_v6 = vstv %s1047_s25  ;;  %p732_p5 = pnand %p731_p4, %p725_p1 }
  0x6e   :  { %v324_v4 = vadd.f32 %v323_v59, %v310_v58  ;;  %v441_v7 = vstv %s1049_s26  ;;  %v361_v10 = vmul.f32 0.5, %v667_v3  ;;  %674 = vtanh.f32 %v415_v2 }
  0x6f   :  { %v337_v8 = vmul.f32 %v336_v37, %v334_v63  ;;  %v348_v9 = vadd.f32 0.5, %v347_v1  ;;  %v429_v11 = vmul.f32 0.5, %v428_v60  ;;  %v439_v12 = vmul.f32 %v438_v6, %v800_v0 }
  0x70   :  { %v452_v13 = vstv %s1052_s2  ;;  %v455_v14 = vstv %s1054_s1  ;;  %v362_v18 = vadd.f32 0.5, %v361_v10  ;;  %v392_v20 = vstv %s1059_s27 }
  0x71   :  { %v669_v15 = vpop.eup %668  ;;  %v338_v16 = vadd.f32 %v337_v8, %v324_v4  ;;  %v351_v17 = vmul.f32 %v350_v53, %v348_v9  ;;  %v453_v19 = vmul.f32 %v452_v13, %v800_v0  ;;  %676 = vtanh.f32 %v429_v11 }
  0x72   :  { %v671_v21 = vpop.eup %670  ;;  %v375_v22 = vmul.f32 0.5, %v669_v15  ;;  %v442_v23 = vadd.f32 %v441_v7, %v439_v12  ;;  %v365_v25 = vmul.f32 %v364_v61, %v362_v18  ;;  %v466_v31 = vstv %s1065_s28 }
  0x73   :  { %v352_v24 = vadd.f32 %v351_v17, %v338_v16  ;;  %v389_v27 = vmul.f32 0.5, %v671_v21  ;;  %v456_v28 = vadd.f32 %v455_v14, %v453_v19  ;;  %v469_v32 = vstv %s1067_s29 }
  0x74   :  { %v376_v26 = vadd.f32 0.5, %v375_v22  ;;  %v443_v29 = vmul.f32 0.5, %v442_v23  ;;  %v467_v38 = vmul.f32 %v466_v31, %v800_v0  ;;  %v406_v40 = vstv %s1070_s30 }
  0x75   :  { %v673_v33 = vpop.eup %672  ;;  %v366_v34 = vadd.f32 %v365_v25, %v352_v24  ;;  %v390_v35 = vadd.f32 0.5, %v389_v27  ;;  %v457_v37 = vmul.f32 0.5, %v456_v28  ;;  %v480_v42 = vstv %s1074_s6 }
  0x76   :  { %v379_v30 = vmul.f32 %v378_v5, %v376_v26  ;;  %v403_v39 = vmul.f32 0.5, %v673_v33  ;;  %678 = vtanh.f32 %v443_v29  ;;  %v470_v41 = vadd.f32 %v469_v32, %v467_v38 }
  0x77   :  { %v393_v36 = vmul.f32 %v392_v20, %v390_v35  ;;  %680 = vtanh.f32 %v457_v37  ;;  %v481_v46 = vmul.f32 %v480_v42, %v800_v0  ;;  %v483_v47 = vstv %s1079_s7 }
  0x78   :  { %v380_v44 = vadd.f32 %v379_v30, %v366_v34  ;;  %v404_v45 = vadd.f32 0.5, %v403_v39  ;;  %v675_v48 = vpop.eup %674  ;;  %v471_v49 = vmul.f32 0.5, %v470_v41  ;;  %v494_v43 = vstv %s1082_s8 }
  0x79   :  { %v497_v51 = vstv %s1084_s9  ;;  %v417_v54 = vmul.f32 0.5, %v675_v48  ;;  %v484_v50 = vadd.f32 %v483_v47, %v481_v46  ;;  %v420_v55 = vstv %s1087_s3 }
  0x7a   :  { %v394_v52 = vadd.f32 %v393_v36, %v380_v44  ;;  %v407_v53 = vmul.f32 %v406_v40, %v404_v45  ;;  %682 = vtanh.f32 %v471_v49  ;;  %v495_v56 = vmul.f32 %v494_v43, %v800_v0 }
  0x7b   :  { %v677_v57 = vpop.eup %676  ;;  %v418_v59 = vadd.f32 0.5, %v417_v54  ;;  %v485_v61 = vmul.f32 0.5, %v484_v50  ;;  %v434_v2 = vstv %s1093_s10  ;;  %v448_v0 = vstv %s1100_s11 }
  0x7c   :  { %v408_v58 = vadd.f32 %v407_v53, %v394_v52  ;;  %v431_v62 = vmul.f32 0.5, %v677_v57  ;;  %v498_v63 = vadd.f32 %v497_v51, %v495_v56  ;;  %v462_v12 = vstv %s1103_s12 }
  0x7d   :  { %v421_v1 = vmul.f32 %v420_v55, %v418_v59  ;;  %684 = vtanh.f32 %v485_v61  ;;  %v476_v19 = vstv %s613_s13  ;;  %v490_v25 = vstv %s616_s15 }
  0x7e   :  { %v432_v60 = vadd.f32 0.5, %v431_v62  ;;  %v499_v3 = vmul.f32 0.5, %v498_v63  ;;  %v504_v32 = vstv %s619_s16  ;;  %v508_v37 = vstv %s1128_s4 }
  0x7f   :  { %v422_v5 = vadd.f32 %v421_v1, %v408_v58 }
  0x80   :  { %v679_v4 = vpop.eup %678  ;;  %v435_v7 = vmul.f32 %v434_v2, %v432_v60  ;;  %686 = vtanh.f32 %v499_v3 }
  0x81   :  { %v681_v6 = vpop.eup %680  ;;  %v445_v8 = vmul.f32 0.5, %v679_v4 }
  0x82   :  { %v459_v9 = vmul.f32 0.5, %v681_v6  ;;  %v436_v10 = vadd.f32 %v435_v7, %v422_v5 }
  0x83   :  { %v446_v11 = vadd.f32 0.5, %v445_v8 }
  0x84   :  { %v460_v13 = vadd.f32 0.5, %v459_v9  ;;  %v683_v14 = vpop.eup %682 }
  0x85   :  { %v449_v15 = vmul.f32 %v448_v0, %v446_v11  ;;  %v473_v17 = vmul.f32 0.5, %v683_v14 }
  0x86   :  { %v463_v16 = vmul.f32 %v462_v12, %v460_v13 }
  0x87   :  { %v450_v18 = vadd.f32 %v449_v15, %v436_v10  ;;  %v685_v21 = vpop.eup %684  ;;  %v474_v22 = vadd.f32 0.5, %v473_v17 }
  0x88   :  { %v487_v23 = vmul.f32 0.5, %v685_v21 }
  0x89   :  { %v464_v20 = vadd.f32 %v463_v16, %v450_v18  ;;  %v477_v24 = vmul.f32 %v476_v19, %v474_v22 }
  0x8a   :  { %v687_v27 = vpop.eup %686  ;;  %v488_v28 = vadd.f32 0.5, %v487_v23 }
  0x8b   :  { %v478_v26 = vadd.f32 %v477_v24, %v464_v20  ;;  %v501_v29 = vmul.f32 0.5, %v687_v27 }
  0x8c   :  { %v491_v31 = vmul.f32 %v490_v25, %v488_v28 }
  0x8d   :  { %v502_v33 = vadd.f32 0.5, %v501_v29 }
  0x8e   :  { %v492_v34 = vadd.f32 %v491_v31, %v478_v26 }
  0x8f   :  { %v505_v35 = vmul.f32 %v504_v32, %v502_v33 }
  0x91   :  { %v506_v38 = vadd.f32 %v505_v35, %v492_v34 }
  0x93   :  { %v509_v30 = vadd.f32 %v508_v37, %v506_v38 }
  0x95   :  { %510 = vst [vmem:[#allocation9] sm:$0x3] %v509_v30 }
  0x96   :  { %735 = shalt.err (!%p732_p5)
}
  0x97   :  { %s736_s22 = scalar_lea.hbm %s1129_s5, 32 }
  0x98   :  { %p737_p6 = scmp.ne.s32.totalorder %s1129_s5, %s736_s22  ;;  %p740_p7 = scmp.lt.u32.totalorder %s736_s22, %s1129_s5 }
  0x9a   :  { %p742_p8 = pnand %p740_p7, %p737_p6 }
  0x9c   :  { %745 = shalt.err (!%p742_p8)
}
  0x9d   :  { %520 = dma.vmem_to_hbm [thread:$0]  %s518_s19, 32, %s1129_s5, [#allocation4]  }
  0x9e   :  { %750 = dma.done.wait [#allocation4], 32  }
  0x9f   :  { %751 = vsyncadd [#allocation4], 4294967264 }
  0xa0   :  { %524 = vsyncpa [#allocation4], 1 }
  0xa1   :  { %525 = vsyncpa [#allocation5], 1 }
  0xa2   :  { %526 = vsyncpa [#allocation7], 1 }

</bundles_post_ra>
